<compile_context>
chip_gen: v7x
topology: tpu7x:2x2x1
jax: 0.10.0
libtpu: 0.0.40
codegen_flags: <defaults>
</compile_context>

<pallas_src>
import functools
import math

import jax
import jax.numpy as jnp
from jax.experimental import pallas as pl


# ----------------------------------------------------------------------------
# Packed-slab layout (shared by host-side packing and the kernel).
# ----------------------------------------------------------------------------

def _pad8(n):
    return -(-n // 8) * 8


def _slab_layout(H, num_layers):
    """Row offsets of every parameter block inside the two slabs.

    slab_h  : width H   (all (K, H) weights, (1, H) biases / LN params)
    slab_4h : width 4H  (FFN first linear weight + bias)
    Every block is padded to a multiple of 8 rows so in-kernel slices are
    sublane-aligned.
    """
    off_h, off_4h = {}, {}
    rh = [0]
    r4 = [0]

    def add_h(name, rows):
        off_h[name] = rh[0]
        rh[0] += _pad8(rows)

    def add_4h(name, rows):
        off_4h[name] = r4[0]
        r4[0] += _pad8(rows)

    add_h("q_w", H); add_h("q_b", 1)
    add_h("c_w", H); add_h("c_b", 1)
    add_h("o_w", H); add_h("o_b", 1)
    for l in range(num_layers):
        add_h(f"L{l}_sa_wv", H); add_h(f"L{l}_sa_bv", 1)
        add_h(f"L{l}_sa_wo", H); add_h(f"L{l}_sa_bo", 1)
        add_h(f"L{l}_ln1_g", 1); add_h(f"L{l}_ln1_b", 1)
        add_h(f"L{l}_ca_wq", H); add_h(f"L{l}_ca_wk", H); add_h(f"L{l}_ca_wv", H)
        add_h(f"L{l}_ca_bq", 1); add_h(f"L{l}_ca_bk", 1); add_h(f"L{l}_ca_bv", 1)
        add_h(f"L{l}_ca_wo", H); add_h(f"L{l}_ca_bo", 1)
        add_h(f"L{l}_ln2_g", 1); add_h(f"L{l}_ln2_b", 1)
        add_h(f"L{l}_ff_w2", 4 * H); add_h(f"L{l}_ff_b2", 1)
        add_h(f"L{l}_ln3_g", 1); add_h(f"L{l}_ln3_b", 1)
        add_4h(f"L{l}_ff_w1", H); add_4h(f"L{l}_ff_b1", 1)
    return off_h, rh[0], off_4h, r4[0]


# ----------------------------------------------------------------------------
# Fused forward kernel: everything stays in VMEM / vregs.
# ----------------------------------------------------------------------------

def _rag_forward_kernel(q_ref, ctx_ref, ph_ref, p4_ref, out_ref, *,
                        B, S, H, nhead, num_layers, off_h, off_4h):
    hd = H // nhead
    scale = 1.0 / math.sqrt(hd)
    f32 = jnp.float32

    # -- static-slice views into the packed parameter slabs (sublane aligned) --
    def wgt(name, rows):
        o = off_h[name]
        return ph_ref[o:o + rows, :]

    def row(name):
        o = off_h[name]
        return ph_ref[o:o + 1, :]

    def wgt4(name, rows):
        o = off_4h[name]
        return p4_ref[o:o + rows, :]

    def row4(name):
        o = off_4h[name]
        return p4_ref[o:o + 1, :]

    def matmul(x, w):
        return jnp.dot(x, w, preferred_element_type=f32)

    def layer_norm(z, g, b):
        mu = jnp.mean(z, axis=-1, keepdims=True)
        zc = z - mu
        var = jnp.mean(zc * zc, axis=-1, keepdims=True)
        return zc * jax.lax.rsqrt(var + 1e-5) * g + b

    def erf(x):
        # Abramowitz & Stegun 7.1.26 polynomial, max abs error ~1.5e-7.
        # TODO(synk): switch to lax.erf once its Mosaic lowering is guaranteed.
        a = jnp.abs(x)
        t = 1.0 / (1.0 + 0.3275911 * a)
        poly = t * (0.254829592 + t * (-0.284496736 + t * (1.421413741
                    + t * (-1.453152027 + t * 1.061405429))))
        y = 1.0 - poly * jnp.exp(-(a * a))
        return jnp.where(x < 0.0, -y, y)

    def gelu(x):  # exact (erf) GELU, as PyTorch F.gelu default
        return 0.5 * x * (1.0 + erf(x * (1.0 / math.sqrt(2.0))))

    # -- static 0/1 head-selection matrices (tiny in-kernel constants) --------
    lane = jax.lax.broadcasted_iota(jnp.int32, (H, nhead), 0)
    head = jax.lax.broadcasted_iota(jnp.int32, (H, nhead), 1)
    sel = ((lane >= head * hd) & (lane < (head + 1) * hd)).astype(f32)   # (H, nh)
    head_t = jax.lax.broadcasted_iota(jnp.int32, (nhead, H), 0)
    lane_t = jax.lax.broadcasted_iota(jnp.int32, (nhead, H), 1)
    sel_t = ((lane_t >= head_t * hd) & (lane_t < (head_t + 1) * hd)).astype(f32)

    # -- input projections -----------------------------------------------------
    x = matmul(q_ref[...], wgt("q_w", H)) + row("q_b")          # (B, H), T == 1
    mem = matmul(ctx_ref[...], wgt("c_w", H)) + row("c_b")      # (S*B, H), rows s*B+b

    # Natural (seq-major) -> batch-major (b*S+s) ONCE, via exact 0/1 permutation
    # matmuls on the MXU (no host transpose, no lane/sublane relayouts).
    rr = jax.lax.broadcasted_iota(jnp.int32, (S, S * B), 0)
    cc = jax.lax.broadcasted_iota(jnp.int32, (S, S * B), 1)
    mem_bm = jnp.concatenate(
        [matmul((cc == rr * B + bi).astype(f32), mem) for bi in range(B)],
        axis=0)                                                 # (B*S, H)

    # -- decoder layers (post-norm, eval: dropout = identity) ------------------
    for l in range(num_layers):
        # Self-attention of the single target token: softmax over one key is
        # exactly 1, so the attention output equals the value projection.
        sa_v = matmul(x, wgt(f"L{l}_sa_wv", H)) + row(f"L{l}_sa_bv")
        sa = matmul(sa_v, wgt(f"L{l}_sa_wo", H)) + row(f"L{l}_sa_bo")
        x = layer_norm(x + sa, row(f"L{l}_ln1_g"), row(f"L{l}_ln1_b"))

        # Cross-attention: one query row per batch over S memory rows.
        q = matmul(x, wgt(f"L{l}_ca_wq", H)) + row(f"L{l}_ca_bq")          # (B, H)
        k_all = matmul(mem_bm, wgt(f"L{l}_ca_wk", H)) + row(f"L{l}_ca_bk")  # (B*S, H)
        v_all = matmul(mem_bm, wgt(f"L{l}_ca_wv", H)) + row(f"L{l}_ca_bv")  # (B*S, H)
        outs = []
        for bi in range(B):
            kb = k_all[bi * S:(bi + 1) * S, :]                             # (S, H)
            vb = v_all[bi * S:(bi + 1) * S, :]
            qb = q[bi:bi + 1, :]                                           # (1, H)
            # Per-head scores with ONE matmul against the head-selection matrix.
            s_bh = matmul(kb * qb, sel) * scale                            # (S, nh)
            m = jnp.max(s_bh, axis=0, keepdims=True)
            p = jnp.exp(s_bh - m)
            p = p / jnp.sum(p, axis=0, keepdims=True)                      # softmax over S
            p_lanes = matmul(p, sel_t)                                     # (S, H)
            outs.append(jnp.sum(p_lanes * vb, axis=0, keepdims=True))      # (1, H)
        attn = jnp.concatenate(outs, axis=0) if B > 1 else outs[0]         # (B, H)
        ca = matmul(attn, wgt(f"L{l}_ca_wo", H)) + row(f"L{l}_ca_bo")
        x = layer_norm(x + ca, row(f"L{l}_ln2_g"), row(f"L{l}_ln2_b"))

        # FFN with exact-erf GELU.
        h1 = gelu(matmul(x, wgt4(f"L{l}_ff_w1", H)) + row4(f"L{l}_ff_b1"))  # (B, 4H)
        ff = matmul(h1, wgt(f"L{l}_ff_w2", 4 * H)) + row(f"L{l}_ff_b2")     # (B, H)
        x = layer_norm(x + ff, row(f"L{l}_ln3_g"), row(f"L{l}_ln3_b"))

    out_ref[...] = matmul(x, wgt("o_w", H)) + row("o_b")        # (B, H)


# ----------------------------------------------------------------------------
# Wrapper: one pallas_call for the whole forward.
# ----------------------------------------------------------------------------

def rag_generator_forward(packed, query_embedding, context_vector, *,
                          nhead, num_layers):
    """query_embedding:(B,H), context_vector:(S,B,H) -> (1,B,H)  (eval forward)."""
    B, H = query_embedding.shape
    S = context_vector.shape[0]
    off_h, rows_h, off_4h, rows_4h = _slab_layout(H, num_layers)
    assert packed["slab_h"].shape == (rows_h, H)
    assert packed["slab_4h"].shape == (rows_4h, 4 * H)

    # All-resident design guard (v7x: 64 MiB physical / 32 MiB default scoped
    # VMEM; v5e/v6e: 128 MiB).  ~165 KB at H=32 / 2 layers.
    resident_bytes = 4 * (rows_h * H + rows_4h * 4 * H)
    assert resident_bytes < 24 * 1024 * 1024, "weight slabs too large for all-resident kernel"
    # TODO(synk): for production hidden sizes switch to grid=(num_layers,) and
    # stream per-layer weight slabs via BlockSpec with the layer axis "arbitrary".

    # Natural row order s*B + b: a pure reshape, no host-side transpose/copy.
    ctx = context_vector.reshape(S * B, H)

    kern = functools.partial(_rag_forward_kernel, B=B, S=S, H=H, nhead=nhead,
                             num_layers=num_layers, off_h=off_h, off_4h=off_4h)
    out = pl.pallas_call(                     # no grid: whole arrays in VMEM
        kern,
        out_shape=jax.ShapeDtypeStruct((B, H), jnp.float32),
    )(query_embedding.astype(jnp.float32), ctx.astype(jnp.float32),
      packed["slab_h"], packed["slab_4h"])
    return out.reshape(1, B, H)               # T == 1 (query.unsqueeze(0))


# ----------------------------------------------------------------------------
# Deterministic PyTorch-layout parameter init + one-time host-side packing.
# ----------------------------------------------------------------------------

def init_params(key, hidden=32, num_layers=2):
    """PyTorch-layout weights: Linear (out,in), MHA in_proj (3H,H), LN (H,)."""
    H = hidden

    def dense(k, n_out, n_in):
        kw, kb = jax.random.split(k)
        w = jax.random.normal(kw, (n_out, n_in), jnp.float32) * 0.05
        b = jax.random.normal(kb, (n_out,), jnp.float32) * 0.01
        return w, b

    keys = jax.random.split(key, 3 + num_layers)
    p = {}
    p["q_w"], p["q_b"] = dense(keys[0], H, H)
    p["c_w"], p["c_b"] = dense(keys[1], H, H)
    p["o_w"], p["o_b"] = dense(keys[2], H, H)

    ones, zeros = jnp.ones((H,), jnp.float32), jnp.zeros((H,), jnp.float32)
    layers = []
    for li in range(num_layers):
        lk = jax.random.split(keys[3 + li], 6)
        sa_in_w, sa_in_b = dense(lk[0], 3 * H, H)
        sa_out_w, sa_out_b = dense(lk[1], H, H)
        ca_in_w, ca_in_b = dense(lk[2], 3 * H, H)
        ca_out_w, ca_out_b = dense(lk[3], H, H)
        ff_w1, ff_b1 = dense(lk[4], 4 * H, H)
        ff_w2, ff_b2 = dense(lk[5], H, 4 * H)
        layers.append(dict(
            sa_in_w=sa_in_w, sa_in_b=sa_in_b, sa_out_w=sa_out_w, sa_out_b=sa_out_b,
            ca_in_w=ca_in_w, ca_in_b=ca_in_b, ca_out_w=ca_out_w, ca_out_b=ca_out_b,
            ff_w1=ff_w1, ff_b1=ff_b1, ff_w2=ff_w2, ff_b2=ff_b2,
            ln1_g=ones, ln1_b=zeros, ln2_g=ones, ln2_b=zeros,
            ln3_g=ones, ln3_b=zeros))
    p["layers"] = layers
    return p


def pack_params(params, hidden, num_layers):
    """Pack every weight/bias into two contiguous (in,out)-layout f32 slabs."""
    H = hidden
    off_h, rows_h, off_4h, rows_4h = _slab_layout(H, num_layers)
    slab_h = jnp.zeros((rows_h, H), jnp.float32)
    slab_4h = jnp.zeros((rows_4h, 4 * H), jnp.float32)

    def put(slab, off, arr):
        arr = jnp.asarray(arr, jnp.float32)
        return slab.at[off:off + arr.shape[0], :].set(arr)

    slab_h = put(slab_h, off_h["q_w"], params["q_w"].T)
    slab_h = put(slab_h, off_h["q_b"], params["q_b"].reshape(1, -1))
    slab_h = put(slab_h, off_h["c_w"], params["c_w"].T)
    slab_h = put(slab_h, off_h["c_b"], params["c_b"].reshape(1, -1))
    slab_h = put(slab_h, off_h["o_w"], params["o_w"].T)
    slab_h = put(slab_h, off_h["o_b"], params["o_b"].reshape(1, -1))

    for l, lyr in enumerate(params["layers"]):
        # Self-attention: only the V third of in_proj is ever needed (single
        # target token => softmax weight == 1).
        slab_h = put(slab_h, off_h[f"L{l}_sa_wv"], lyr["sa_in_w"][2 * H:3 * H, :].T)
        slab_h = put(slab_h, off_h[f"L{l}_sa_bv"], lyr["sa_in_b"][2 * H:3 * H].reshape(1, -1))
        slab_h = put(slab_h, off_h[f"L{l}_sa_wo"], lyr["sa_out_w"].T)
        slab_h = put(slab_h, off_h[f"L{l}_sa_bo"], lyr["sa_out_b"].reshape(1, -1))
        slab_h = put(slab_h, off_h[f"L{l}_ln1_g"], lyr["ln1_g"].reshape(1, -1))
        slab_h = put(slab_h, off_h[f"L{l}_ln1_b"], lyr["ln1_b"].reshape(1, -1))
        # Cross-attention: in_proj pre-split into Wq / Wk / Wv blocks.
        slab_h = put(slab_h, off_h[f"L{l}_ca_wq"], lyr["ca_in_w"][0:H, :].T)
        slab_h = put(slab_h, off_h[f"L{l}_ca_wk"], lyr["ca_in_w"][H:2 * H, :].T)
        slab_h = put(slab_h, off_h[f"L{l}_ca_wv"], lyr["ca_in_w"][2 * H:3 * H, :].T)
        slab_h = put(slab_h, off_h[f"L{l}_ca_bq"], lyr["ca_in_b"][0:H].reshape(1, -1))
        slab_h = put(slab_h, off_h[f"L{l}_ca_bk"], lyr["ca_in_b"][H:2 * H].reshape(1, -1))
        slab_h = put(slab_h, off_h[f"L{l}_ca_bv"], lyr["ca_in_b"][2 * H:3 * H].reshape(1, -1))
        slab_h = put(slab_h, off_h[f"L{l}_ca_wo"], lyr["ca_out_w"].T)
        slab_h = put(slab_h, off_h[f"L{l}_ca_bo"], lyr["ca_out_b"].reshape(1, -1))
        slab_h = put(slab_h, off_h[f"L{l}_ln2_g"], lyr["ln2_g"].reshape(1, -1))
        slab_h = put(slab_h, off_h[f"L{l}_ln2_b"], lyr["ln2_b"].reshape(1, -1))
        slab_h = put(slab_h, off_h[f"L{l}_ff_w2"], lyr["ff_w2"].T)
        slab_h = put(slab_h, off_h[f"L{l}_ff_b2"], lyr["ff_b2"].reshape(1, -1))
        slab_h = put(slab_h, off_h[f"L{l}_ln3_g"], lyr["ln3_g"].reshape(1, -1))
        slab_h = put(slab_h, off_h[f"L{l}_ln3_b"], lyr["ln3_b"].reshape(1, -1))
        slab_4h = put(slab_4h, off_4h[f"L{l}_ff_w1"], lyr["ff_w1"].T)
        slab_4h = put(slab_4h, off_4h[f"L{l}_ff_b1"], lyr["ff_b1"].reshape(1, -1))

    return dict(slab_h=slab_h, slab_4h=slab_4h)


if __name__ == "__main__":
    HIDDEN, NHEAD, NUM_LAYERS = 32, 8, 2
    B, S = 2, 8

    key = jax.random.PRNGKey(0)
    kp, kq, kc = jax.random.split(key, 3)
    params = init_params(kp, hidden=HIDDEN, num_layers=NUM_LAYERS)
    packed = pack_params(params, hidden=HIDDEN, num_layers=NUM_LAYERS)

    query_embedding = jax.random.normal(kq, (B, HIDDEN), jnp.float32)
    context_vector = jax.random.normal(kc, (S, B, HIDDEN), jnp.float32)
    # retrieved_docs (List[str]) is unused by the forward compute.

    fwd = jax.jit(functools.partial(rag_generator_forward,
                                    nhead=NHEAD, num_layers=NUM_LAYERS))
    out = jax.block_until_ready(fwd(packed, query_embedding, context_vector))

    assert out.shape == (1, B, HIDDEN), out.shape
    assert bool(jnp.all(jnp.isfinite(out)))
    print("KERNEL_OK")
</pallas_src>

<mosaic_0001>
module attributes {stable_mosaic.version = 11 : i64} {
  func.func @_rag_forward_kernel(%arg0: memref<2x32xf32, #tpu.memory_space<vmem>>, %arg1: memref<16x32xf32, #tpu.memory_space<vmem>>, %arg2: memref<968x32xf32, #tpu.memory_space<vmem>>, %arg3: memref<80x128xf32, #tpu.memory_space<vmem>>, %arg4: memref<2x32xf32, #tpu.memory_space<vmem>>) attributes {dimension_semantics = [], scalar_prefetch = 0 : i64, scratch_operands = 0 : i64, tpu.core_type = #tpu.core_type<tc>} {
    %0 = tpu.iota {dimensions = array<i32: 0>} : vector<32x8xi32>
    %1 = tpu.iota {dimensions = array<i32: 1>} : vector<32x8xi32>
    %c4_i32 = arith.constant 4 : i32
    %2 = vector.broadcast %c4_i32 : i32 to vector<32x8xi32>
    %3 = arith.muli %1, %2 : vector<32x8xi32>
    %4 = arith.cmpi sge, %0, %3 : vector<32x8xi32>
    %c1_i32 = arith.constant 1 : i32
    %5 = vector.broadcast %c1_i32 : i32 to vector<32x8xi32>
    %6 = arith.addi %1, %5 : vector<32x8xi32>
    %c4_i32_0 = arith.constant 4 : i32
    %7 = vector.broadcast %c4_i32_0 : i32 to vector<32x8xi32>
    %8 = arith.muli %6, %7 : vector<32x8xi32>
    %9 = arith.cmpi slt, %0, %8 : vector<32x8xi32>
    %10 = arith.andi %4, %9 : vector<32x8xi1>
    %11 = arith.extui %10 : vector<32x8xi1> to vector<32x8xi32>
    %12 = arith.sitofp %11 : vector<32x8xi32> to vector<32x8xf32>
    %13 = tpu.iota {dimensions = array<i32: 0>} : vector<8x32xi32>
    %14 = tpu.iota {dimensions = array<i32: 1>} : vector<8x32xi32>
    %c4_i32_1 = arith.constant 4 : i32
    %15 = vector.broadcast %c4_i32_1 : i32 to vector<8x32xi32>
    %16 = arith.muli %13, %15 : vector<8x32xi32>
    %17 = arith.cmpi sge, %14, %16 : vector<8x32xi32>
    %c1_i32_2 = arith.constant 1 : i32
    %18 = vector.broadcast %c1_i32_2 : i32 to vector<8x32xi32>
    %19 = arith.addi %13, %18 : vector<8x32xi32>
    %c4_i32_3 = arith.constant 4 : i32
    %20 = vector.broadcast %c4_i32_3 : i32 to vector<8x32xi32>
    %21 = arith.muli %19, %20 : vector<8x32xi32>
    %22 = arith.cmpi slt, %14, %21 : vector<8x32xi32>
    %23 = arith.andi %17, %22 : vector<8x32xi1>
    %24 = arith.extui %23 : vector<8x32xi1> to vector<8x32xi32>
    %25 = arith.sitofp %24 : vector<8x32xi32> to vector<8x32xf32>
    %c0 = arith.constant 0 : index
    %c0_4 = arith.constant 0 : index
    %26 = vector.load %arg0[%c0, %c0_4] : memref<2x32xf32, #tpu.memory_space<vmem>>, vector<2x32xf32>
    %c0_5 = arith.constant 0 : index
    %c0_6 = arith.constant 0 : index
    %27 = vector.load %arg2[%c0_5, %c0_6] : memref<968x32xf32, #tpu.memory_space<vmem>>, vector<32x32xf32>
    %cst = arith.constant dense<0.000000e+00> : vector<2x32xf32>
    %28 = tpu.matmul %26, %27, %cst {dimension_numbers = #tpu.dot_dimension_numbers<[1], [0], [0], [1], [0, 0, 1, 1], [], []>} : vector<2x32xf32>, vector<32x32xf32>, vector<2x32xf32> -> vector<2x32xf32>
    %c32 = arith.constant 32 : index
    %c0_7 = arith.constant 0 : index
    %29 = vector.load %arg2[%c32, %c0_7] : memref<968x32xf32, #tpu.memory_space<vmem>>, vector<1x32xf32>
    %30 = vector.broadcast %29 : vector<1x32xf32> to vector<2x32xf32>
    %31 = arith.addf %28, %30 : vector<2x32xf32>
    %c0_8 = arith.constant 0 : index
    %c0_9 = arith.constant 0 : index
    %32 = vector.load %arg1[%c0_8, %c0_9] : memref<16x32xf32, #tpu.memory_space<vmem>>, vector<16x32xf32>
    %c40 = arith.constant 40 : index
    %c0_10 = arith.constant 0 : index
    %33 = vector.load %arg2[%c40, %c0_10] : memref<968x32xf32, #tpu.memory_space<vmem>>, vector<32x32xf32>
    %cst_11 = arith.constant dense<0.000000e+00> : vector<16x32xf32>
    %34 = tpu.matmul %32, %33, %cst_11 {dimension_numbers = #tpu.dot_dimension_numbers<[1], [0], [0], [1], [0, 0, 1, 1], [], []>} : vector<16x32xf32>, vector<32x32xf32>, vector<16x32xf32> -> vector<16x32xf32>
    %c72 = arith.constant 72 : index
    %c0_12 = arith.constant 0 : index
    %35 = vector.load %arg2[%c72, %c0_12] : memref<968x32xf32, #tpu.memory_space<vmem>>, vector<1x32xf32>
    %36 = vector.broadcast %35 : vector<1x32xf32> to vector<16x32xf32>
    %37 = arith.addf %34, %36 : vector<16x32xf32>
    %38 = tpu.iota {dimensions = array<i32: 0>} : vector<8x16xi32>
    %39 = tpu.iota {dimensions = array<i32: 1>} : vector<8x16xi32>
    %c2_i32 = arith.constant 2 : i32
    %40 = vector.broadcast %c2_i32 : i32 to vector<8x16xi32>
    %41 = arith.muli %38, %40 : vector<8x16xi32>
    %c0_i32 = arith.constant 0 : i32
    %42 = vector.broadcast %c0_i32 : i32 to vector<8x16xi32>
    %43 = arith.addi %41, %42 : vector<8x16xi32>
    %44 = arith.cmpi eq, %39, %43 : vector<8x16xi32>
    %45 = arith.extui %44 : vector<8x16xi1> to vector<8x16xi32>
    %46 = arith.sitofp %45 : vector<8x16xi32> to vector<8x16xf32>
    %cst_13 = arith.constant dense<0.000000e+00> : vector<8x32xf32>
    %47 = tpu.matmul %46, %37, %cst_13 {dimension_numbers = #tpu.dot_dimension_numbers<[1], [0], [0], [1], [0, 0, 1, 1], [], []>} : vector<8x16xf32>, vector<16x32xf32>, vector<8x32xf32> -> vector<8x32xf32>
    %c2_i32_14 = arith.constant 2 : i32
    %48 = vector.broadcast %c2_i32_14 : i32 to vector<8x16xi32>
    %49 = arith.muli %38, %48 : vector<8x16xi32>
    %c1_i32_15 = arith.constant 1 : i32
    %50 = vector.broadcast %c1_i32_15 : i32 to vector<8x16xi32>
    %51 = arith.addi %49, %50 : vector<8x16xi32>
    %52 = arith.cmpi eq, %39, %51 : vector<8x16xi32>
    %53 = arith.extui %52 : vector<8x16xi1> to vector<8x16xi32>
    %54 = arith.sitofp %53 : vector<8x16xi32> to vector<8x16xf32>
    %cst_16 = arith.constant dense<0.000000e+00> : vector<8x32xf32>
    %55 = tpu.matmul %54, %37, %cst_16 {dimension_numbers = #tpu.dot_dimension_numbers<[1], [0], [0], [1], [0, 0, 1, 1], [], []>} : vector<8x16xf32>, vector<16x32xf32>, vector<8x32xf32> -> vector<8x32xf32>
    %56 = tpu.concatenate %47, %55 in 0 : vector<8x32xf32>, vector<8x32xf32> -> vector<16x32xf32>
    %c120 = arith.constant 120 : index
    %c0_17 = arith.constant 0 : index
    %57 = vector.load %arg2[%c120, %c0_17] : memref<968x32xf32, #tpu.memory_space<vmem>>, vector<32x32xf32>
    %cst_18 = arith.constant dense<0.000000e+00> : vector<2x32xf32>
    %58 = tpu.matmul %31, %57, %cst_18 {dimension_numbers = #tpu.dot_dimension_numbers<[1], [0], [0], [1], [0, 0, 1, 1], [], []>} : vector<2x32xf32>, vector<32x32xf32>, vector<2x32xf32> -> vector<2x32xf32>
    %c152 = arith.constant 152 : index
    %c0_19 = arith.constant 0 : index
    %59 = vector.load %arg2[%c152, %c0_19] : memref<968x32xf32, #tpu.memory_space<vmem>>, vector<1x32xf32>
    %60 = vector.broadcast %59 : vector<1x32xf32> to vector<2x32xf32>
    %61 = arith.addf %58, %60 : vector<2x32xf32>
    %c160 = arith.constant 160 : index
    %c0_20 = arith.constant 0 : index
    %62 = vector.load %arg2[%c160, %c0_20] : memref<968x32xf32, #tpu.memory_space<vmem>>, vector<32x32xf32>
    %cst_21 = arith.constant dense<0.000000e+00> : vector<2x32xf32>
    %63 = tpu.matmul %61, %62, %cst_21 {dimension_numbers = #tpu.dot_dimension_numbers<[1], [0], [0], [1], [0, 0, 1, 1], [], []>} : vector<2x32xf32>, vector<32x32xf32>, vector<2x32xf32> -> vector<2x32xf32>
    %c192 = arith.constant 192 : index
    %c0_22 = arith.constant 0 : index
    %64 = vector.load %arg2[%c192, %c0_22] : memref<968x32xf32, #tpu.memory_space<vmem>>, vector<1x32xf32>
    %65 = vector.broadcast %64 : vector<1x32xf32> to vector<2x32xf32>
    %66 = arith.addf %63, %65 : vector<2x32xf32>
    %67 = arith.addf %31, %66 : vector<2x32xf32>
    %c200 = arith.constant 200 : index
    %c0_23 = arith.constant 0 : index
    %68 = vector.load %arg2[%c200, %c0_23] : memref<968x32xf32, #tpu.memory_space<vmem>>, vector<1x32xf32>
    %c208 = arith.constant 208 : index
    %c0_24 = arith.constant 0 : index
    %69 = vector.load %arg2[%c208, %c0_24] : memref<968x32xf32, #tpu.memory_space<vmem>>, vector<1x32xf32>
    %cst_25 = arith.constant dense<0.000000e+00> : vector<2xf32>
    %70 = vector.multi_reduction <add>, %67, %cst_25 [1] : vector<2x32xf32> to vector<2xf32>
    %71 = vector.shape_cast %70 : vector<2xf32> to vector<2x1xf32>
    %cst_26 = arith.constant 3.200000e+01 : f32
    %72 = vector.broadcast %cst_26 : f32 to vector<2x1xf32>
    %73 = arith.divf %71, %72 : vector<2x1xf32>
    %74 = vector.broadcast %73 : vector<2x1xf32> to vector<2x32xf32>
    %75 = arith.subf %67, %74 : vector<2x32xf32>
    %76 = arith.mulf %75, %75 : vector<2x32xf32>
    %cst_27 = arith.constant dense<0.000000e+00> : vector<2xf32>
    %77 = vector.multi_reduction <add>, %76, %cst_27 [1] : vector<2x32xf32> to vector<2xf32>
    %78 = vector.shape_cast %77 : vector<2xf32> to vector<2x1xf32>
    %cst_28 = arith.constant 3.200000e+01 : f32
    %79 = vector.broadcast %cst_28 : f32 to vector<2x1xf32>
    %80 = arith.divf %78, %79 : vector<2x1xf32>
    %cst_29 = arith.constant 9.99999974E-6 : f32
    %81 = vector.broadcast %cst_29 : f32 to vector<2x1xf32>
    %82 = arith.addf %80, %81 : vector<2x1xf32>
    %83 = math.rsqrt %82 : vector<2x1xf32>
    %84 = vector.broadcast %83 : vector<2x1xf32> to vector<2x32xf32>
    %85 = arith.mulf %75, %84 : vector<2x32xf32>
    %86 = vector.broadcast %68 : vector<1x32xf32> to vector<2x32xf32>
    %87 = arith.mulf %85, %86 : vector<2x32xf32>
    %88 = vector.broadcast %69 : vector<1x32xf32> to vector<2x32xf32>
    %89 = arith.addf %87, %88 : vector<2x32xf32>
    %c216 = arith.constant 216 : index
    %c0_30 = arith.constant 0 : index
    %90 = vector.load %arg2[%c216, %c0_30] : memref<968x32xf32, #tpu.memory_space<vmem>>, vector<32x32xf32>
    %cst_31 = arith.constant dense<0.000000e+00> : vector<2x32xf32>
    %91 = tpu.matmul %89, %90, %cst_31 {dimension_numbers = #tpu.dot_dimension_numbers<[1], [0], [0], [1], [0, 0, 1, 1], [], []>} : vector<2x32xf32>, vector<32x32xf32>, vector<2x32xf32> -> vector<2x32xf32>
    %c312 = arith.constant 312 : index
    %c0_32 = arith.constant 0 : index
    %92 = vector.load %arg2[%c312, %c0_32] : memref<968x32xf32, #tpu.memory_space<vmem>>, vector<1x32xf32>
    %93 = vector.broadcast %92 : vector<1x32xf32> to vector<2x32xf32>
    %94 = arith.addf %91, %93 : vector<2x32xf32>
    %c248 = arith.constant 248 : index
    %c0_33 = arith.constant 0 : index
    %95 = vector.load %arg2[%c248, %c0_33] : memref<968x32xf32, #tpu.memory_space<vmem>>, vector<32x32xf32>
    %cst_34 = arith.constant dense<0.000000e+00> : vector<16x32xf32>
    %96 = tpu.matmul %56, %95, %cst_34 {dimension_numbers = #tpu.dot_dimension_numbers<[1], [0], [0], [1], [0, 0, 1, 1], [], []>} : vector<16x32xf32>, vector<32x32xf32>, vector<16x32xf32> -> vector<16x32xf32>
    %c320 = arith.constant 320 : index
    %c0_35 = arith.constant 0 : index
    %97 = vector.load %arg2[%c320, %c0_35] : memref<968x32xf32, #tpu.memory_space<vmem>>, vector<1x32xf32>
    %98 = vector.broadcast %97 : vector<1x32xf32> to vector<16x32xf32>
    %99 = arith.addf %96, %98 : vector<16x32xf32>
    %c280 = arith.constant 280 : index
    %c0_36 = arith.constant 0 : index
    %100 = vector.load %arg2[%c280, %c0_36] : memref<968x32xf32, #tpu.memory_space<vmem>>, vector<32x32xf32>
    %cst_37 = arith.constant dense<0.000000e+00> : vector<16x32xf32>
    %101 = tpu.matmul %56, %100, %cst_37 {dimension_numbers = #tpu.dot_dimension_numbers<[1], [0], [0], [1], [0, 0, 1, 1], [], []>} : vector<16x32xf32>, vector<32x32xf32>, vector<16x32xf32> -> vector<16x32xf32>
    %c328 = arith.constant 328 : index
    %c0_38 = arith.constant 0 : index
    %102 = vector.load %arg2[%c328, %c0_38] : memref<968x32xf32, #tpu.memory_space<vmem>>, vector<1x32xf32>
    %103 = vector.broadcast %102 : vector<1x32xf32> to vector<16x32xf32>
    %104 = arith.addf %101, %103 : vector<16x32xf32>
    %105 = vector.extract_strided_slice %99 {offsets = [0, 0], sizes = [8, 32], strides = [1, 1]} : vector<16x32xf32> to vector<8x32xf32>
    %106 = vector.extract_strided_slice %104 {offsets = [0, 0], sizes = [8, 32], strides = [1, 1]} : vector<16x32xf32> to vector<8x32xf32>
    %107 = vector.extract_strided_slice %94 {offsets = [0, 0], sizes = [1, 32], strides = [1, 1]} : vector<2x32xf32> to vector<1x32xf32>
    %108 = vector.broadcast %107 : vector<1x32xf32> to vector<8x32xf32>
    %109 = arith.mulf %105, %108 : vector<8x32xf32>
    %cst_39 = arith.constant dense<0.000000e+00> : vector<8x8xf32>
    %110 = tpu.matmul %109, %12, %cst_39 {dimension_numbers = #tpu.dot_dimension_numbers<[1], [0], [0], [1], [0, 0, 1, 1], [], []>} : vector<8x32xf32>, vector<32x8xf32>, vector<8x8xf32> -> vector<8x8xf32>
    %cst_40 = arith.constant 5.000000e-01 : f32
    %111 = vector.broadcast %cst_40 : f32 to vector<8x8xf32>
    %112 = arith.mulf %110, %111 : vector<8x8xf32>
    %cst_41 = arith.constant dense<0xFF800000> : vector<8xf32>
    %113 = vector.multi_reduction <maximumf>, %112, %cst_41 [0] : vector<8x8xf32> to vector<8xf32>
    %114 = vector.shape_cast %113 : vector<8xf32> to vector<1x8xf32>
    %115 = vector.broadcast %114 : vector<1x8xf32> to vector<8x8xf32>
    %116 = arith.subf %112, %115 : vector<8x8xf32>
    %117 = math.exp %116 : vector<8x8xf32>
    %cst_42 = arith.constant dense<0.000000e+00> : vector<8xf32>
    %118 = vector.multi_reduction <add>, %117, %cst_42 [0] : vector<8x8xf32> to vector<8xf32>
    %119 = vector.shape_cast %118 : vector<8xf32> to vector<1x8xf32>
    %120 = vector.broadcast %119 : vector<1x8xf32> to vector<8x8xf32>
    %121 = arith.divf %117, %120 : vector<8x8xf32>
    %cst_43 = arith.constant dense<0.000000e+00> : vector<8x32xf32>
    %122 = tpu.matmul %121, %25, %cst_43 {dimension_numbers = #tpu.dot_dimension_numbers<[1], [0], [0], [1], [0, 0, 1, 1], [], []>} : vector<8x8xf32>, vector<8x32xf32>, vector<8x32xf32> -> vector<8x32xf32>
    %123 = arith.mulf %122, %106 : vector<8x32xf32>
    %cst_44 = arith.constant dense<0.000000e+00> : vector<32xf32>
    %124 = vector.multi_reduction <add>, %123, %cst_44 [0] : vector<8x32xf32> to vector<32xf32>
    %125 = vector.shape_cast %124 : vector<32xf32> to vector<1x32xf32>
    %126 = vector.extract_strided_slice %99 {offsets = [8, 0], sizes = [8, 32], strides = [1, 1]} : vector<16x32xf32> to vector<8x32xf32>
    %127 = vector.extract_strided_slice %104 {offsets = [8, 0], sizes = [8, 32], strides = [1, 1]} : vector<16x32xf32> to vector<8x32xf32>
    %128 = vector.extract_strided_slice %94 {offsets = [1, 0], sizes = [1, 32], strides = [1, 1]} : vector<2x32xf32> to vector<1x32xf32>
    %129 = vector.broadcast %128 : vector<1x32xf32> to vector<8x32xf32>
    %130 = arith.mulf %126, %129 : vector<8x32xf32>
    %cst_45 = arith.constant dense<0.000000e+00> : vector<8x8xf32>
    %131 = tpu.matmul %130, %12, %cst_45 {dimension_numbers = #tpu.dot_dimension_numbers<[1], [0], [0], [1], [0, 0, 1, 1], [], []>} : vector<8x32xf32>, vector<32x8xf32>, vector<8x8xf32> -> vector<8x8xf32>
    %cst_46 = arith.constant 5.000000e-01 : f32
    %132 = vector.broadcast %cst_46 : f32 to vector<8x8xf32>
    %133 = arith.mulf %131, %132 : vector<8x8xf32>
    %cst_47 = arith.constant dense<0xFF800000> : vector<8xf32>
    %134 = vector.multi_reduction <maximumf>, %133, %cst_47 [0] : vector<8x8xf32> to vector<8xf32>
    %135 = vector.shape_cast %134 : vector<8xf32> to vector<1x8xf32>
    %136 = vector.broadcast %135 : vector<1x8xf32> to vector<8x8xf32>
    %137 = arith.subf %133, %136 : vector<8x8xf32>
    %138 = math.exp %137 : vector<8x8xf32>
    %cst_48 = arith.constant dense<0.000000e+00> : vector<8xf32>
    %139 = vector.multi_reduction <add>, %138, %cst_48 [0] : vector<8x8xf32> to vector<8xf32>
    %140 = vector.shape_cast %139 : vector<8xf32> to vector<1x8xf32>
    %141 = vector.broadcast %140 : vector<1x8xf32> to vector<8x8xf32>
    %142 = arith.divf %138, %141 : vector<8x8xf32>
    %cst_49 = arith.constant dense<0.000000e+00> : vector<8x32xf32>
    %143 = tpu.matmul %142, %25, %cst_49 {dimension_numbers = #tpu.dot_dimension_numbers<[1], [0], [0], [1], [0, 0, 1, 1], [], []>} : vector<8x8xf32>, vector<8x32xf32>, vector<8x32xf32> -> vector<8x32xf32>
    %144 = arith.mulf %143, %127 : vector<8x32xf32>
    %cst_50 = arith.constant dense<0.000000e+00> : vector<32xf32>
    %145 = vector.multi_reduction <add>, %144, %cst_50 [0] : vector<8x32xf32> to vector<32xf32>
    %146 = vector.shape_cast %145 : vector<32xf32> to vector<1x32xf32>
    %147 = tpu.concatenate %125, %146 in 0 : vector<1x32xf32>, vector<1x32xf32> -> vector<2x32xf32>
    %c336 = arith.constant 336 : index
    %c0_51 = arith.constant 0 : index
    %148 = vector.load %arg2[%c336, %c0_51] : memref<968x32xf32, #tpu.memory_space<vmem>>, vector<32x32xf32>
    %cst_52 = arith.constant dense<0.000000e+00> : vector<2x32xf32>
    %149 = tpu.matmul %147, %148, %cst_52 {dimension_numbers = #tpu.dot_dimension_numbers<[1], [0], [0], [1], [0, 0, 1, 1], [], []>} : vector<2x32xf32>, vector<32x32xf32>, vector<2x32xf32> -> vector<2x32xf32>
    %c368 = arith.constant 368 : index
    %c0_53 = arith.constant 0 : index
    %150 = vector.load %arg2[%c368, %c0_53] : memref<968x32xf32, #tpu.memory_space<vmem>>, vector<1x32xf32>
    %151 = vector.broadcast %150 : vector<1x32xf32> to vector<2x32xf32>
    %152 = arith.addf %149, %151 : vector<2x32xf32>
    %153 = arith.addf %89, %152 : vector<2x32xf32>
    %c376 = arith.constant 376 : index
    %c0_54 = arith.constant 0 : index
    %154 = vector.load %arg2[%c376, %c0_54] : memref<968x32xf32, #tpu.memory_space<vmem>>, vector<1x32xf32>
    %c384 = arith.constant 384 : index
    %c0_55 = arith.constant 0 : index
    %155 = vector.load %arg2[%c384, %c0_55] : memref<968x32xf32, #tpu.memory_space<vmem>>, vector<1x32xf32>
    %cst_56 = arith.constant dense<0.000000e+00> : vector<2xf32>
    %156 = vector.multi_reduction <add>, %153, %cst_56 [1] : vector<2x32xf32> to vector<2xf32>
    %157 = vector.shape_cast %156 : vector<2xf32> to vector<2x1xf32>
    %cst_57 = arith.constant 3.200000e+01 : f32
    %158 = vector.broadcast %cst_57 : f32 to vector<2x1xf32>
    %159 = arith.divf %157, %158 : vector<2x1xf32>
    %160 = vector.broadcast %159 : vector<2x1xf32> to vector<2x32xf32>
    %161 = arith.subf %153, %160 : vector<2x32xf32>
    %162 = arith.mulf %161, %161 : vector<2x32xf32>
    %cst_58 = arith.constant dense<0.000000e+00> : vector<2xf32>
    %163 = vector.multi_reduction <add>, %162, %cst_58 [1] : vector<2x32xf32> to vector<2xf32>
    %164 = vector.shape_cast %163 : vector<2xf32> to vector<2x1xf32>
    %cst_59 = arith.constant 3.200000e+01 : f32
    %165 = vector.broadcast %cst_59 : f32 to vector<2x1xf32>
    %166 = arith.divf %164, %165 : vector<2x1xf32>
    %cst_60 = arith.constant 9.99999974E-6 : f32
    %167 = vector.broadcast %cst_60 : f32 to vector<2x1xf32>
    %168 = arith.addf %166, %167 : vector<2x1xf32>
    %169 = math.rsqrt %168 : vector<2x1xf32>
    %170 = vector.broadcast %169 : vector<2x1xf32> to vector<2x32xf32>
    %171 = arith.mulf %161, %170 : vector<2x32xf32>
    %172 = vector.broadcast %154 : vector<1x32xf32> to vector<2x32xf32>
    %173 = arith.mulf %171, %172 : vector<2x32xf32>
    %174 = vector.broadcast %155 : vector<1x32xf32> to vector<2x32xf32>
    %175 = arith.addf %173, %174 : vector<2x32xf32>
    %c0_61 = arith.constant 0 : index
    %c0_62 = arith.constant 0 : index
    %176 = vector.load %arg3[%c0_61, %c0_62] : memref<80x128xf32, #tpu.memory_space<vmem>>, vector<32x128xf32>
    %cst_63 = arith.constant dense<0.000000e+00> : vector<2x128xf32>
    %177 = tpu.matmul %175, %176, %cst_63 {dimension_numbers = #tpu.dot_dimension_numbers<[1], [0], [0], [1], [0, 0, 1, 1], [], []>} : vector<2x32xf32>, vector<32x128xf32>, vector<2x128xf32> -> vector<2x128xf32>
    %c32_64 = arith.constant 32 : index
    %c0_65 = arith.constant 0 : index
    %178 = vector.load %arg3[%c32_64, %c0_65] : memref<80x128xf32, #tpu.memory_space<vmem>>, vector<1x128xf32>
    %179 = vector.broadcast %178 : vector<1x128xf32> to vector<2x128xf32>
    %180 = arith.addf %177, %179 : vector<2x128xf32>
    %cst_66 = arith.constant 5.000000e-01 : f32
    %181 = vector.broadcast %cst_66 : f32 to vector<2x128xf32>
    %182 = arith.mulf %181, %180 : vector<2x128xf32>
    %cst_67 = arith.constant 0.707106769 : f32
    %183 = vector.broadcast %cst_67 : f32 to vector<2x128xf32>
    %184 = arith.mulf %180, %183 : vector<2x128xf32>
    %185 = math.absf %184 : vector<2x128xf32>
    %cst_68 = arith.constant 0.327591091 : f32
    %186 = vector.broadcast %cst_68 : f32 to vector<2x128xf32>
    %187 = arith.mulf %186, %185 : vector<2x128xf32>
    %cst_69 = arith.constant 1.000000e+00 : f32
    %188 = vector.broadcast %cst_69 : f32 to vector<2x128xf32>
    %189 = arith.addf %188, %187 : vector<2x128xf32>
    %cst_70 = arith.constant 1.000000e+00 : f32
    %190 = vector.broadcast %cst_70 : f32 to vector<2x128xf32>
    %191 = arith.divf %190, %189 : vector<2x128xf32>
    %cst_71 = arith.constant 1.06140542 : f32
    %192 = vector.broadcast %cst_71 : f32 to vector<2x128xf32>
    %193 = arith.mulf %191, %192 : vector<2x128xf32>
    %cst_72 = arith.constant -1.45315206 : f32
    %194 = vector.broadcast %cst_72 : f32 to vector<2x128xf32>
    %195 = arith.addf %194, %193 : vector<2x128xf32>
    %196 = arith.mulf %191, %195 : vector<2x128xf32>
    %cst_73 = arith.constant 1.42141378 : f32
    %197 = vector.broadcast %cst_73 : f32 to vector<2x128xf32>
    %198 = arith.addf %197, %196 : vector<2x128xf32>
    %199 = arith.mulf %191, %198 : vector<2x128xf32>
    %cst_74 = arith.constant -0.284496725 : f32
    %200 = vector.broadcast %cst_74 : f32 to vector<2x128xf32>
    %201 = arith.addf %200, %199 : vector<2x128xf32>
    %202 = arith.mulf %191, %201 : vector<2x128xf32>
    %cst_75 = arith.constant 0.254829586 : f32
    %203 = vector.broadcast %cst_75 : f32 to vector<2x128xf32>
    %204 = arith.addf %203, %202 : vector<2x128xf32>
    %205 = arith.mulf %191, %204 : vector<2x128xf32>
    %206 = arith.mulf %185, %185 : vector<2x128xf32>
    %cst_76 = arith.constant 0.000000e+00 : f32
    %207 = vector.broadcast %cst_76 : f32 to vector<2x128xf32>
    %208 = arith.subf %207, %206 : vector<2x128xf32>
    %209 = math.exp %208 : vector<2x128xf32>
    %210 = arith.mulf %205, %209 : vector<2x128xf32>
    %cst_77 = arith.constant 1.000000e+00 : f32
    %211 = vector.broadcast %cst_77 : f32 to vector<2x128xf32>
    %212 = arith.subf %211, %210 : vector<2x128xf32>
    %cst_78 = arith.constant 0.000000e+00 : f32
    %213 = vector.broadcast %cst_78 : f32 to vector<2x128xf32>
    %214 = arith.cmpf olt, %184, %213 : vector<2x128xf32>
    %cst_79 = arith.constant 0.000000e+00 : f32
    %215 = vector.broadcast %cst_79 : f32 to vector<2x128xf32>
    %216 = arith.subf %215, %212 : vector<2x128xf32>
    %217 = arith.select %214, %216, %212 : vector<2x128xi1>, vector<2x128xf32>
    %cst_80 = arith.constant 1.000000e+00 : f32
    %218 = vector.broadcast %cst_80 : f32 to vector<2x128xf32>
    %219 = arith.addf %218, %217 : vector<2x128xf32>
    %220 = arith.mulf %182, %219 : vector<2x128xf32>
    %c392 = arith.constant 392 : index
    %c0_81 = arith.constant 0 : index
    %221 = vector.load %arg2[%c392, %c0_81] : memref<968x32xf32, #tpu.memory_space<vmem>>, vector<128x32xf32>
    %cst_82 = arith.constant dense<0.000000e+00> : vector<2x32xf32>
    %222 = tpu.matmul %220, %221, %cst_82 {dimension_numbers = #tpu.dot_dimension_numbers<[1], [0], [0], [1], [0, 0, 1, 1], [], []>} : vector<2x128xf32>, vector<128x32xf32>, vector<2x32xf32> -> vector<2x32xf32>
    %c520 = arith.constant 520 : index
    %c0_83 = arith.constant 0 : index
    %223 = vector.load %arg2[%c520, %c0_83] : memref<968x32xf32, #tpu.memory_space<vmem>>, vector<1x32xf32>
    %224 = vector.broadcast %223 : vector<1x32xf32> to vector<2x32xf32>
    %225 = arith.addf %222, %224 : vector<2x32xf32>
    %226 = arith.addf %175, %225 : vector<2x32xf32>
    %c528 = arith.constant 528 : index
    %c0_84 = arith.constant 0 : index
    %227 = vector.load %arg2[%c528, %c0_84] : memref<968x32xf32, #tpu.memory_space<vmem>>, vector<1x32xf32>
    %c536 = arith.constant 536 : index
    %c0_85 = arith.constant 0 : index
    %228 = vector.load %arg2[%c536, %c0_85] : memref<968x32xf32, #tpu.memory_space<vmem>>, vector<1x32xf32>
    %cst_86 = arith.constant dense<0.000000e+00> : vector<2xf32>
    %229 = vector.multi_reduction <add>, %226, %cst_86 [1] : vector<2x32xf32> to vector<2xf32>
    %230 = vector.shape_cast %229 : vector<2xf32> to vector<2x1xf32>
    %cst_87 = arith.constant 3.200000e+01 : f32
    %231 = vector.broadcast %cst_87 : f32 to vector<2x1xf32>
    %232 = arith.divf %230, %231 : vector<2x1xf32>
    %233 = vector.broadcast %232 : vector<2x1xf32> to vector<2x32xf32>
    %234 = arith.subf %226, %233 : vector<2x32xf32>
    %235 = arith.mulf %234, %234 : vector<2x32xf32>
    %cst_88 = arith.constant dense<0.000000e+00> : vector<2xf32>
    %236 = vector.multi_reduction <add>, %235, %cst_88 [1] : vector<2x32xf32> to vector<2xf32>
    %237 = vector.shape_cast %236 : vector<2xf32> to vector<2x1xf32>
    %cst_89 = arith.constant 3.200000e+01 : f32
    %238 = vector.broadcast %cst_89 : f32 to vector<2x1xf32>
    %239 = arith.divf %237, %238 : vector<2x1xf32>
    %cst_90 = arith.constant 9.99999974E-6 : f32
    %240 = vector.broadcast %cst_90 : f32 to vector<2x1xf32>
    %241 = arith.addf %239, %240 : vector<2x1xf32>
    %242 = math.rsqrt %241 : vector<2x1xf32>
    %243 = vector.broadcast %242 : vector<2x1xf32> to vector<2x32xf32>
    %244 = arith.mulf %234, %243 : vector<2x32xf32>
    %245 = vector.broadcast %227 : vector<1x32xf32> to vector<2x32xf32>
    %246 = arith.mulf %244, %245 : vector<2x32xf32>
    %247 = vector.broadcast %228 : vector<1x32xf32> to vector<2x32xf32>
    %248 = arith.addf %246, %247 : vector<2x32xf32>
    %c544 = arith.constant 544 : index
    %c0_91 = arith.constant 0 : index
    %249 = vector.load %arg2[%c544, %c0_91] : memref<968x32xf32, #tpu.memory_space<vmem>>, vector<32x32xf32>
    %cst_92 = arith.constant dense<0.000000e+00> : vector<2x32xf32>
    %250 = tpu.matmul %248, %249, %cst_92 {dimension_numbers = #tpu.dot_dimension_numbers<[1], [0], [0], [1], [0, 0, 1, 1], [], []>} : vector<2x32xf32>, vector<32x32xf32>, vector<2x32xf32> -> vector<2x32xf32>
    %c576 = arith.constant 576 : index
    %c0_93 = arith.constant 0 : index
    %251 = vector.load %arg2[%c576, %c0_93] : memref<968x32xf32, #tpu.memory_space<vmem>>, vector<1x32xf32>
    %252 = vector.broadcast %251 : vector<1x32xf32> to vector<2x32xf32>
    %253 = arith.addf %250, %252 : vector<2x32xf32>
    %c584 = arith.constant 584 : index
    %c0_94 = arith.constant 0 : index
    %254 = vector.load %arg2[%c584, %c0_94] : memref<968x32xf32, #tpu.memory_space<vmem>>, vector<32x32xf32>
    %cst_95 = arith.constant dense<0.000000e+00> : vector<2x32xf32>
    %255 = tpu.matmul %253, %254, %cst_95 {dimension_numbers = #tpu.dot_dimension_numbers<[1], [0], [0], [1], [0, 0, 1, 1], [], []>} : vector<2x32xf32>, vector<32x32xf32>, vector<2x32xf32> -> vector<2x32xf32>
    %c616 = arith.constant 616 : index
    %c0_96 = arith.constant 0 : index
    %256 = vector.load %arg2[%c616, %c0_96] : memref<968x32xf32, #tpu.memory_space<vmem>>, vector<1x32xf32>
    %257 = vector.broadcast %256 : vector<1x32xf32> to vector<2x32xf32>
    %258 = arith.addf %255, %257 : vector<2x32xf32>
    %259 = arith.addf %248, %258 : vector<2x32xf32>
    %c624 = arith.constant 624 : index
    %c0_97 = arith.constant 0 : index
    %260 = vector.load %arg2[%c624, %c0_97] : memref<968x32xf32, #tpu.memory_space<vmem>>, vector<1x32xf32>
    %c632 = arith.constant 632 : index
    %c0_98 = arith.constant 0 : index
    %261 = vector.load %arg2[%c632, %c0_98] : memref<968x32xf32, #tpu.memory_space<vmem>>, vector<1x32xf32>
    %cst_99 = arith.constant dense<0.000000e+00> : vector<2xf32>
    %262 = vector.multi_reduction <add>, %259, %cst_99 [1] : vector<2x32xf32> to vector<2xf32>
    %263 = vector.shape_cast %262 : vector<2xf32> to vector<2x1xf32>
    %cst_100 = arith.constant 3.200000e+01 : f32
    %264 = vector.broadcast %cst_100 : f32 to vector<2x1xf32>
    %265 = arith.divf %263, %264 : vector<2x1xf32>
    %266 = vector.broadcast %265 : vector<2x1xf32> to vector<2x32xf32>
    %267 = arith.subf %259, %266 : vector<2x32xf32>
    %268 = arith.mulf %267, %267 : vector<2x32xf32>
    %cst_101 = arith.constant dense<0.000000e+00> : vector<2xf32>
    %269 = vector.multi_reduction <add>, %268, %cst_101 [1] : vector<2x32xf32> to vector<2xf32>
    %270 = vector.shape_cast %269 : vector<2xf32> to vector<2x1xf32>
    %cst_102 = arith.constant 3.200000e+01 : f32
    %271 = vector.broadcast %cst_102 : f32 to vector<2x1xf32>
    %272 = arith.divf %270, %271 : vector<2x1xf32>
    %cst_103 = arith.constant 9.99999974E-6 : f32
    %273 = vector.broadcast %cst_103 : f32 to vector<2x1xf32>
    %274 = arith.addf %272, %273 : vector<2x1xf32>
    %275 = math.rsqrt %274 : vector<2x1xf32>
    %276 = vector.broadcast %275 : vector<2x1xf32> to vector<2x32xf32>
    %277 = arith.mulf %267, %276 : vector<2x32xf32>
    %278 = vector.broadcast %260 : vector<1x32xf32> to vector<2x32xf32>
    %279 = arith.mulf %277, %278 : vector<2x32xf32>
    %280 = vector.broadcast %261 : vector<1x32xf32> to vector<2x32xf32>
    %281 = arith.addf %279, %280 : vector<2x32xf32>
    %c640 = arith.constant 640 : index
    %c0_104 = arith.constant 0 : index
    %282 = vector.load %arg2[%c640, %c0_104] : memref<968x32xf32, #tpu.memory_space<vmem>>, vector<32x32xf32>
    %cst_105 = arith.constant dense<0.000000e+00> : vector<2x32xf32>
    %283 = tpu.matmul %281, %282, %cst_105 {dimension_numbers = #tpu.dot_dimension_numbers<[1], [0], [0], [1], [0, 0, 1, 1], [], []>} : vector<2x32xf32>, vector<32x32xf32>, vector<2x32xf32> -> vector<2x32xf32>
    %c736 = arith.constant 736 : index
    %c0_106 = arith.constant 0 : index
    %284 = vector.load %arg2[%c736, %c0_106] : memref<968x32xf32, #tpu.memory_space<vmem>>, vector<1x32xf32>
    %285 = vector.broadcast %284 : vector<1x32xf32> to vector<2x32xf32>
    %286 = arith.addf %283, %285 : vector<2x32xf32>
    %c672 = arith.constant 672 : index
    %c0_107 = arith.constant 0 : index
    %287 = vector.load %arg2[%c672, %c0_107] : memref<968x32xf32, #tpu.memory_space<vmem>>, vector<32x32xf32>
    %cst_108 = arith.constant dense<0.000000e+00> : vector<16x32xf32>
    %288 = tpu.matmul %56, %287, %cst_108 {dimension_numbers = #tpu.dot_dimension_numbers<[1], [0], [0], [1], [0, 0, 1, 1], [], []>} : vector<16x32xf32>, vector<32x32xf32>, vector<16x32xf32> -> vector<16x32xf32>
    %c744 = arith.constant 744 : index
    %c0_109 = arith.constant 0 : index
    %289 = vector.load %arg2[%c744, %c0_109] : memref<968x32xf32, #tpu.memory_space<vmem>>, vector<1x32xf32>
    %290 = vector.broadcast %289 : vector<1x32xf32> to vector<16x32xf32>
    %291 = arith.addf %288, %290 : vector<16x32xf32>
    %c704 = arith.constant 704 : index
    %c0_110 = arith.constant 0 : index
    %292 = vector.load %arg2[%c704, %c0_110] : memref<968x32xf32, #tpu.memory_space<vmem>>, vector<32x32xf32>
    %cst_111 = arith.constant dense<0.000000e+00> : vector<16x32xf32>
    %293 = tpu.matmul %56, %292, %cst_111 {dimension_numbers = #tpu.dot_dimension_numbers<[1], [0], [0], [1], [0, 0, 1, 1], [], []>} : vector<16x32xf32>, vector<32x32xf32>, vector<16x32xf32> -> vector<16x32xf32>
    %c752 = arith.constant 752 : index
    %c0_112 = arith.constant 0 : index
    %294 = vector.load %arg2[%c752, %c0_112] : memref<968x32xf32, #tpu.memory_space<vmem>>, vector<1x32xf32>
    %295 = vector.broadcast %294 : vector<1x32xf32> to vector<16x32xf32>
    %296 = arith.addf %293, %295 : vector<16x32xf32>
    %297 = vector.extract_strided_slice %291 {offsets = [0, 0], sizes = [8, 32], strides = [1, 1]} : vector<16x32xf32> to vector<8x32xf32>
    %298 = vector.extract_strided_slice %296 {offsets = [0, 0], sizes = [8, 32], strides = [1, 1]} : vector<16x32xf32> to vector<8x32xf32>
    %299 = vector.extract_strided_slice %286 {offsets = [0, 0], sizes = [1, 32], strides = [1, 1]} : vector<2x32xf32> to vector<1x32xf32>
    %300 = vector.broadcast %299 : vector<1x32xf32> to vector<8x32xf32>
    %301 = arith.mulf %297, %300 : vector<8x32xf32>
    %cst_113 = arith.constant dense<0.000000e+00> : vector<8x8xf32>
    %302 = tpu.matmul %301, %12, %cst_113 {dimension_numbers = #tpu.dot_dimension_numbers<[1], [0], [0], [1], [0, 0, 1, 1], [], []>} : vector<8x32xf32>, vector<32x8xf32>, vector<8x8xf32> -> vector<8x8xf32>
    %cst_114 = arith.constant 5.000000e-01 : f32
    %303 = vector.broadcast %cst_114 : f32 to vector<8x8xf32>
    %304 = arith.mulf %302, %303 : vector<8x8xf32>
    %cst_115 = arith.constant dense<0xFF800000> : vector<8xf32>
    %305 = vector.multi_reduction <maximumf>, %304, %cst_115 [0] : vector<8x8xf32> to vector<8xf32>
    %306 = vector.shape_cast %305 : vector<8xf32> to vector<1x8xf32>
    %307 = vector.broadcast %306 : vector<1x8xf32> to vector<8x8xf32>
    %308 = arith.subf %304, %307 : vector<8x8xf32>
    %309 = math.exp %308 : vector<8x8xf32>
    %cst_116 = arith.constant dense<0.000000e+00> : vector<8xf32>
    %310 = vector.multi_reduction <add>, %309, %cst_116 [0] : vector<8x8xf32> to vector<8xf32>
    %311 = vector.shape_cast %310 : vector<8xf32> to vector<1x8xf32>
    %312 = vector.broadcast %311 : vector<1x8xf32> to vector<8x8xf32>
    %313 = arith.divf %309, %312 : vector<8x8xf32>
    %cst_117 = arith.constant dense<0.000000e+00> : vector<8x32xf32>
    %314 = tpu.matmul %313, %25, %cst_117 {dimension_numbers = #tpu.dot_dimension_numbers<[1], [0], [0], [1], [0, 0, 1, 1], [], []>} : vector<8x8xf32>, vector<8x32xf32>, vector<8x32xf32> -> vector<8x32xf32>
    %315 = arith.mulf %314, %298 : vector<8x32xf32>
    %cst_118 = arith.constant dense<0.000000e+00> : vector<32xf32>
    %316 = vector.multi_reduction <add>, %315, %cst_118 [0] : vector<8x32xf32> to vector<32xf32>
    %317 = vector.shape_cast %316 : vector<32xf32> to vector<1x32xf32>
    %318 = vector.extract_strided_slice %291 {offsets = [8, 0], sizes = [8, 32], strides = [1, 1]} : vector<16x32xf32> to vector<8x32xf32>
    %319 = vector.extract_strided_slice %296 {offsets = [8, 0], sizes = [8, 32], strides = [1, 1]} : vector<16x32xf32> to vector<8x32xf32>
    %320 = vector.extract_strided_slice %286 {offsets = [1, 0], sizes = [1, 32], strides = [1, 1]} : vector<2x32xf32> to vector<1x32xf32>
    %321 = vector.broadcast %320 : vector<1x32xf32> to vector<8x32xf32>
    %322 = arith.mulf %318, %321 : vector<8x32xf32>
    %cst_119 = arith.constant dense<0.000000e+00> : vector<8x8xf32>
    %323 = tpu.matmul %322, %12, %cst_119 {dimension_numbers = #tpu.dot_dimension_numbers<[1], [0], [0], [1], [0, 0, 1, 1], [], []>} : vector<8x32xf32>, vector<32x8xf32>, vector<8x8xf32> -> vector<8x8xf32>
    %cst_120 = arith.constant 5.000000e-01 : f32
    %324 = vector.broadcast %cst_120 : f32 to vector<8x8xf32>
    %325 = arith.mulf %323, %324 : vector<8x8xf32>
    %cst_121 = arith.constant dense<0xFF800000> : vector<8xf32>
    %326 = vector.multi_reduction <maximumf>, %325, %cst_121 [0] : vector<8x8xf32> to vector<8xf32>
    %327 = vector.shape_cast %326 : vector<8xf32> to vector<1x8xf32>
    %328 = vector.broadcast %327 : vector<1x8xf32> to vector<8x8xf32>
    %329 = arith.subf %325, %328 : vector<8x8xf32>
    %330 = math.exp %329 : vector<8x8xf32>
    %cst_122 = arith.constant dense<0.000000e+00> : vector<8xf32>
    %331 = vector.multi_reduction <add>, %330, %cst_122 [0] : vector<8x8xf32> to vector<8xf32>
    %332 = vector.shape_cast %331 : vector<8xf32> to vector<1x8xf32>
    %333 = vector.broadcast %332 : vector<1x8xf32> to vector<8x8xf32>
    %334 = arith.divf %330, %333 : vector<8x8xf32>
    %cst_123 = arith.constant dense<0.000000e+00> : vector<8x32xf32>
    %335 = tpu.matmul %334, %25, %cst_123 {dimension_numbers = #tpu.dot_dimension_numbers<[1], [0], [0], [1], [0, 0, 1, 1], [], []>} : vector<8x8xf32>, vector<8x32xf32>, vector<8x32xf32> -> vector<8x32xf32>
    %336 = arith.mulf %335, %319 : vector<8x32xf32>
    %cst_124 = arith.constant dense<0.000000e+00> : vector<32xf32>
    %337 = vector.multi_reduction <add>, %336, %cst_124 [0] : vector<8x32xf32> to vector<32xf32>
    %338 = vector.shape_cast %337 : vector<32xf32> to vector<1x32xf32>
    %339 = tpu.concatenate %317, %338 in 0 : vector<1x32xf32>, vector<1x32xf32> -> vector<2x32xf32>
    %c760 = arith.constant 760 : index
    %c0_125 = arith.constant 0 : index
    %340 = vector.load %arg2[%c760, %c0_125] : memref<968x32xf32, #tpu.memory_space<vmem>>, vector<32x32xf32>
    %cst_126 = arith.constant dense<0.000000e+00> : vector<2x32xf32>
    %341 = tpu.matmul %339, %340, %cst_126 {dimension_numbers = #tpu.dot_dimension_numbers<[1], [0], [0], [1], [0, 0, 1, 1], [], []>} : vector<2x32xf32>, vector<32x32xf32>, vector<2x32xf32> -> vector<2x32xf32>
    %c792 = arith.constant 792 : index
    %c0_127 = arith.constant 0 : index
    %342 = vector.load %arg2[%c792, %c0_127] : memref<968x32xf32, #tpu.memory_space<vmem>>, vector<1x32xf32>
    %343 = vector.broadcast %342 : vector<1x32xf32> to vector<2x32xf32>
    %344 = arith.addf %341, %343 : vector<2x32xf32>
    %345 = arith.addf %281, %344 : vector<2x32xf32>
    %c800 = arith.constant 800 : index
    %c0_128 = arith.constant 0 : index
    %346 = vector.load %arg2[%c800, %c0_128] : memref<968x32xf32, #tpu.memory_space<vmem>>, vector<1x32xf32>
    %c808 = arith.constant 808 : index
    %c0_129 = arith.constant 0 : index
    %347 = vector.load %arg2[%c808, %c0_129] : memref<968x32xf32, #tpu.memory_space<vmem>>, vector<1x32xf32>
    %cst_130 = arith.constant dense<0.000000e+00> : vector<2xf32>
    %348 = vector.multi_reduction <add>, %345, %cst_130 [1] : vector<2x32xf32> to vector<2xf32>
    %349 = vector.shape_cast %348 : vector<2xf32> to vector<2x1xf32>
    %cst_131 = arith.constant 3.200000e+01 : f32
    %350 = vector.broadcast %cst_131 : f32 to vector<2x1xf32>
    %351 = arith.divf %349, %350 : vector<2x1xf32>
    %352 = vector.broadcast %351 : vector<2x1xf32> to vector<2x32xf32>
    %353 = arith.subf %345, %352 : vector<2x32xf32>
    %354 = arith.mulf %353, %353 : vector<2x32xf32>
    %cst_132 = arith.constant dense<0.000000e+00> : vector<2xf32>
    %355 = vector.multi_reduction <add>, %354, %cst_132 [1] : vector<2x32xf32> to vector<2xf32>
    %356 = vector.shape_cast %355 : vector<2xf32> to vector<2x1xf32>
    %cst_133 = arith.constant 3.200000e+01 : f32
    %357 = vector.broadcast %cst_133 : f32 to vector<2x1xf32>
    %358 = arith.divf %356, %357 : vector<2x1xf32>
    %cst_134 = arith.constant 9.99999974E-6 : f32
    %359 = vector.broadcast %cst_134 : f32 to vector<2x1xf32>
    %360 = arith.addf %358, %359 : vector<2x1xf32>
    %361 = math.rsqrt %360 : vector<2x1xf32>
    %362 = vector.broadcast %361 : vector<2x1xf32> to vector<2x32xf32>
    %363 = arith.mulf %353, %362 : vector<2x32xf32>
    %364 = vector.broadcast %346 : vector<1x32xf32> to vector<2x32xf32>
    %365 = arith.mulf %363, %364 : vector<2x32xf32>
    %366 = vector.broadcast %347 : vector<1x32xf32> to vector<2x32xf32>
    %367 = arith.addf %365, %366 : vector<2x32xf32>
    %c40_135 = arith.constant 40 : index
    %c0_136 = arith.constant 0 : index
    %368 = vector.load %arg3[%c40_135, %c0_136] : memref<80x128xf32, #tpu.memory_space<vmem>>, vector<32x128xf32>
    %cst_137 = arith.constant dense<0.000000e+00> : vector<2x128xf32>
    %369 = tpu.matmul %367, %368, %cst_137 {dimension_numbers = #tpu.dot_dimension_numbers<[1], [0], [0], [1], [0, 0, 1, 1], [], []>} : vector<2x32xf32>, vector<32x128xf32>, vector<2x128xf32> -> vector<2x128xf32>
    %c72_138 = arith.constant 72 : index
    %c0_139 = arith.constant 0 : index
    %370 = vector.load %arg3[%c72_138, %c0_139] : memref<80x128xf32, #tpu.memory_space<vmem>>, vector<1x128xf32>
    %371 = vector.broadcast %370 : vector<1x128xf32> to vector<2x128xf32>
    %372 = arith.addf %369, %371 : vector<2x128xf32>
    %cst_140 = arith.constant 5.000000e-01 : f32
    %373 = vector.broadcast %cst_140 : f32 to vector<2x128xf32>
    %374 = arith.mulf %373, %372 : vector<2x128xf32>
    %cst_141 = arith.constant 0.707106769 : f32
    %375 = vector.broadcast %cst_141 : f32 to vector<2x128xf32>
    %376 = arith.mulf %372, %375 : vector<2x128xf32>
    %377 = math.absf %376 : vector<2x128xf32>
    %cst_142 = arith.constant 0.327591091 : f32
    %378 = vector.broadcast %cst_142 : f32 to vector<2x128xf32>
    %379 = arith.mulf %378, %377 : vector<2x128xf32>
    %cst_143 = arith.constant 1.000000e+00 : f32
    %380 = vector.broadcast %cst_143 : f32 to vector<2x128xf32>
    %381 = arith.addf %380, %379 : vector<2x128xf32>
    %cst_144 = arith.constant 1.000000e+00 : f32
    %382 = vector.broadcast %cst_144 : f32 to vector<2x128xf32>
    %383 = arith.divf %382, %381 : vector<2x128xf32>
    %cst_145 = arith.constant 1.06140542 : f32
    %384 = vector.broadcast %cst_145 : f32 to vector<2x128xf32>
    %385 = arith.mulf %383, %384 : vector<2x128xf32>
    %cst_146 = arith.constant -1.45315206 : f32
    %386 = vector.broadcast %cst_146 : f32 to vector<2x128xf32>
    %387 = arith.addf %386, %385 : vector<2x128xf32>
    %388 = arith.mulf %383, %387 : vector<2x128xf32>
    %cst_147 = arith.constant 1.42141378 : f32
    %389 = vector.broadcast %cst_147 : f32 to vector<2x128xf32>
    %390 = arith.addf %389, %388 : vector<2x128xf32>
    %391 = arith.mulf %383, %390 : vector<2x128xf32>
    %cst_148 = arith.constant -0.284496725 : f32
    %392 = vector.broadcast %cst_148 : f32 to vector<2x128xf32>
    %393 = arith.addf %392, %391 : vector<2x128xf32>
    %394 = arith.mulf %383, %393 : vector<2x128xf32>
    %cst_149 = arith.constant 0.254829586 : f32
    %395 = vector.broadcast %cst_149 : f32 to vector<2x128xf32>
    %396 = arith.addf %395, %394 : vector<2x128xf32>
    %397 = arith.mulf %383, %396 : vector<2x128xf32>
    %398 = arith.mulf %377, %377 : vector<2x128xf32>
    %cst_150 = arith.constant 0.000000e+00 : f32
    %399 = vector.broadcast %cst_150 : f32 to vector<2x128xf32>
    %400 = arith.subf %399, %398 : vector<2x128xf32>
    %401 = math.exp %400 : vector<2x128xf32>
    %402 = arith.mulf %397, %401 : vector<2x128xf32>
    %cst_151 = arith.constant 1.000000e+00 : f32
    %403 = vector.broadcast %cst_151 : f32 to vector<2x128xf32>
    %404 = arith.subf %403, %402 : vector<2x128xf32>
    %cst_152 = arith.constant 0.000000e+00 : f32
    %405 = vector.broadcast %cst_152 : f32 to vector<2x128xf32>
    %406 = arith.cmpf olt, %376, %405 : vector<2x128xf32>
    %cst_153 = arith.constant 0.000000e+00 : f32
    %407 = vector.broadcast %cst_153 : f32 to vector<2x128xf32>
    %408 = arith.subf %407, %404 : vector<2x128xf32>
    %409 = arith.select %406, %408, %404 : vector<2x128xi1>, vector<2x128xf32>
    %cst_154 = arith.constant 1.000000e+00 : f32
    %410 = vector.broadcast %cst_154 : f32 to vector<2x128xf32>
    %411 = arith.addf %410, %409 : vector<2x128xf32>
    %412 = arith.mulf %374, %411 : vector<2x128xf32>
    %c816 = arith.constant 816 : index
    %c0_155 = arith.constant 0 : index
    %413 = vector.load %arg2[%c816, %c0_155] : memref<968x32xf32, #tpu.memory_space<vmem>>, vector<128x32xf32>
    %cst_156 = arith.constant dense<0.000000e+00> : vector<2x32xf32>
    %414 = tpu.matmul %412, %413, %cst_156 {dimension_numbers = #tpu.dot_dimension_numbers<[1], [0], [0], [1], [0, 0, 1, 1], [], []>} : vector<2x128xf32>, vector<128x32xf32>, vector<2x32xf32> -> vector<2x32xf32>
    %c944 = arith.constant 944 : index
    %c0_157 = arith.constant 0 : index
    %415 = vector.load %arg2[%c944, %c0_157] : memref<968x32xf32, #tpu.memory_space<vmem>>, vector<1x32xf32>
    %416 = vector.broadcast %415 : vector<1x32xf32> to vector<2x32xf32>
    %417 = arith.addf %414, %416 : vector<2x32xf32>
    %418 = arith.addf %367, %417 : vector<2x32xf32>
    %c952 = arith.constant 952 : index
    %c0_158 = arith.constant 0 : index
    %419 = vector.load %arg2[%c952, %c0_158] : memref<968x32xf32, #tpu.memory_space<vmem>>, vector<1x32xf32>
    %c960 = arith.constant 960 : index
    %c0_159 = arith.constant 0 : index
    %420 = vector.load %arg2[%c960, %c0_159] : memref<968x32xf32, #tpu.memory_space<vmem>>, vector<1x32xf32>
    %cst_160 = arith.constant dense<0.000000e+00> : vector<2xf32>
    %421 = vector.multi_reduction <add>, %418, %cst_160 [1] : vector<2x32xf32> to vector<2xf32>
    %422 = vector.shape_cast %421 : vector<2xf32> to vector<2x1xf32>
    %cst_161 = arith.constant 3.200000e+01 : f32
    %423 = vector.broadcast %cst_161 : f32 to vector<2x1xf32>
    %424 = arith.divf %422, %423 : vector<2x1xf32>
    %425 = vector.broadcast %424 : vector<2x1xf32> to vector<2x32xf32>
    %426 = arith.subf %418, %425 : vector<2x32xf32>
    %427 = arith.mulf %426, %426 : vector<2x32xf32>
    %cst_162 = arith.constant dense<0.000000e+00> : vector<2xf32>
    %428 = vector.multi_reduction <add>, %427, %cst_162 [1] : vector<2x32xf32> to vector<2xf32>
    %429 = vector.shape_cast %428 : vector<2xf32> to vector<2x1xf32>
    %cst_163 = arith.constant 3.200000e+01 : f32
    %430 = vector.broadcast %cst_163 : f32 to vector<2x1xf32>
    %431 = arith.divf %429, %430 : vector<2x1xf32>
    %cst_164 = arith.constant 9.99999974E-6 : f32
    %432 = vector.broadcast %cst_164 : f32 to vector<2x1xf32>
    %433 = arith.addf %431, %432 : vector<2x1xf32>
    %434 = math.rsqrt %433 : vector<2x1xf32>
    %435 = vector.broadcast %434 : vector<2x1xf32> to vector<2x32xf32>
    %436 = arith.mulf %426, %435 : vector<2x32xf32>
    %437 = vector.broadcast %419 : vector<1x32xf32> to vector<2x32xf32>
    %438 = arith.mulf %436, %437 : vector<2x32xf32>
    %439 = vector.broadcast %420 : vector<1x32xf32> to vector<2x32xf32>
    %440 = arith.addf %438, %439 : vector<2x32xf32>
    %c80 = arith.constant 80 : index
    %c0_165 = arith.constant 0 : index
    %441 = vector.load %arg2[%c80, %c0_165] : memref<968x32xf32, #tpu.memory_space<vmem>>, vector<32x32xf32>
    %cst_166 = arith.constant dense<0.000000e+00> : vector<2x32xf32>
    %442 = tpu.matmul %440, %441, %cst_166 {dimension_numbers = #tpu.dot_dimension_numbers<[1], [0], [0], [1], [0, 0, 1, 1], [], []>} : vector<2x32xf32>, vector<32x32xf32>, vector<2x32xf32> -> vector<2x32xf32>
    %c112 = arith.constant 112 : index
    %c0_167 = arith.constant 0 : index
    %443 = vector.load %arg2[%c112, %c0_167] : memref<968x32xf32, #tpu.memory_space<vmem>>, vector<1x32xf32>
    %444 = vector.broadcast %443 : vector<1x32xf32> to vector<2x32xf32>
    %445 = arith.addf %442, %444 : vector<2x32xf32>
    %c0_168 = arith.constant 0 : index
    %c0_169 = arith.constant 0 : index
    %446 = vector.load %arg4[%c0_168, %c0_169] : memref<2x32xf32, #tpu.memory_space<vmem>>, vector<2x32xf32>
    tpu.vector_store %arg4[%c0_168, %c0_169], %445 {strides = array<i32>} : memref<2x32xf32, #tpu.memory_space<vmem>>, vector<2x32xf32>,
    return
  }
}

</mosaic_0001>

<bundles_post_ra>
// kernel: rag_generator_forward.1
= control target key start
LH: loop header
LB: loop body
LE: loop exit
PB: predicated region body
PF: predicated region fallthrough
CT: control target
= control target key end

     0   :  { %v3599_v3 = vmov 0.0|0.0   ;;  %vm3600_vm0 = vmmov 0   ;;  %v3601_v6 = vmov 0.0   ;;  %s4331_s0 = inlined_call_operand.vmem [shape: f32[2,32], index: 0, kind: input, shape index: {}]   ;;  %s4332_s1 = inlined_call_operand.vmem [shape: f32[16,32], index: 1, kind: input, shape index: {}]   ;;  %s4333_s2 = inlined_call_operand.vmem [shape: f32[968,32], index: 2, kind: input, shape index: {}]   ;;  %s4334_s3 = inlined_call_operand.vmem [shape: f32[80,128], index: 3, kind: input, shape index: {}]   ;;  %s4335_s4 = inlined_call_operand.hbm [shape: f32[2,32], index: 4, kind: output, shape index: {}]  }
   0x1   :  { %v57_v0 = vld [vmem:[%s4333_s2] sm:$0xff]  ;;  %v58_v1 = vld [vmem:[%s4333_s2 + $0x8] sm:$0xff]  ;;  %v59_v2 = vld [vmem:[%s4333_s2 + $0x10] sm:$0xff]  ;;  %3343 = vmatprep.subr.bf16.mxu1 %v3599_v3  ;;  %3016 = vmatprep.mubr.msk.f32.mxu1 %vm3600_vm0, %v3601_v6 }
   0x2   :  { %v3344_v4 = vpack.c.bf16 %v58_v1, %v57_v0  ;;  %v60_v5 = vld [vmem:[%s4333_s2 + $0x18] sm:$0xff]  ;;  %v142_v7 = vld [vmem:[%s4333_s2 + $0x28] sm:$0xff]  ;;  %v143_v8 = vld [vmem:[%s4333_s2 + $0x30] sm:$0xff]  ;;  %3363 = vmatprep.subr.bf16.mxu0 %v3599_v3  ;;  %3052 = vmatprep.mubr.msk.f32.mxu0 %vm3600_vm0, %v3601_v6 }
   0x3   :  { %v3347_v9 = vpack.c.bf16 %v60_v5, %v59_v2  ;;  %v387_v10 = vld [vmem:[%s4333_s2 + $0x78] sm:$0xff]  ;;  %v3349_v11 = vpack.c.bf16 %v143_v8, %v142_v7  ;;  %v388_v12 = vld [vmem:[%s4333_s2 + $0x80] sm:$0xff] }
   0x4   :  { %3345 = vmatpush3.bf16.msra.mxu1 %v3344_v4 }
   0x5   :  { %3346 = vmatprep.subr.bf16.mxu1 %v3599_v3 }
   0x6   :  { %9 = vsyncpa [#allocation3], 0  ;;  %v144_v13 = vld [vmem:[%s4333_s2 + $0x38] sm:$0xff]  ;;  %v145_v14 = vld [vmem:[%s4333_s2 + $0x40] sm:$0xff]  ;;  %v3364_v15 = vpack.c.bf16 %v388_v12, %v387_v10  ;;  %vm66_vm1 = vcmask 261120   ;;  %v18_v24 = vlaneseq  ;;  %vm236_vm3 = vcmask 130048  }
   0x7   :  { %v56_v16 = vld [vmem:[%s4331_s0] sm:$0x3]  ;;  %v3353_v17 = vpack.c.bf16 %v145_v14, %v144_v13  ;;  %v141_v19 = vld [vmem:[%s4332_s1 + $0x8] sm:$0xff]  ;;  %v390_v21 = vld [vmem:[%s4333_s2 + $0x90] sm:$0xff]  ;;  %vm554_vm5 = vcmask 254976   ;;  %s3604_s30 = smov [#allocation2]  }
   0x8   :  { %3348 = vmatpush3.bf16.msra.mxu1 %v3347_v9  ;;  %3365 = vmatpush3.bf16.msra.mxu0 %v3364_v15  ;;  %v140_v18 = vld [vmem:[%s4332_s1] sm:$0xff]  ;;  %v389_v20 = vld [vmem:[%s4333_s2 + $0x88] sm:$0xff]  ;;  %v3697_v28 = vshrl.u32 %v18_v24, 7  ;;  %v3704_v30 = vand.u32 127, %v18_v24  ;;  %v471_v43 = vld [vmem:[%s4333_s2 + $0xb0] sm:$0xff]  ;;  %s2752_s5 = sshll.u32 %s3604_s30, 4  ;;  %s2753_s5 = int_to_ptr.vmem [resolvable:$true] %s2752_s5 }
   0x9   :  { %3350 = vmatprep.subr.bf16.mxu1 %v3349_v11  ;;  %3366 = vmatprep.subr.bf16.mxu0 %v3599_v3  ;;  %v3367_v22 = vpack.c.bf16 %v390_v21, %v389_v20  ;;  %v2765_v23 = vld [vmem:[%s4333_s2 + $0x20] ss:$0 sm:$0xff]  ;;  %v2767_v29 = vld [vmem:[%s4333_s2 + $0x48] ss:$0 sm:$0xff]  ;;  %v472_v44 = vld [vmem:[%s4333_s2 + $0xb8] sm:$0xff]  ;;  %s3575_s6 = scalar_lea.vmem %s2753_s5, 32  ;;  %p3580_p1 = scmp.lt.s32.totalorder %s2753_s5, %s2753_s5 }
   0xa   :  { %v232_v31 = vmul.u32 2, %v3697_v28  ;;  %v469_v39 = vld [vmem:[%s4333_s2 + $0xa0] sm:$0xff]  ;;  %v470_v40 = vld [vmem:[%s4333_s2 + $0xa8] sm:$0xff]  ;;  %v3373_v45 = vpack.c.bf16 %v472_v44, %v471_v43  ;;  %v661_v46 = vld [vmem:[%s4333_s2 + $0xf8] sm:$0xff]  ;;  %v20_v20 = vadd.s32 8, %v3697_v28  ;;  %v25_v21 = vmul.u32 4, %v3704_v30  ;;  %p3576_p0 = scmp.ne.s32.totalorder %s2753_s5, %s3575_s6  ;;  %p3581_p2 = scmp.lt.s32.totalorder %s3575_s6, %s3575_s6 }
   0xb   :  { %3017 = vmatmul.mubr.msk.f32.vlgmr.msra.gmra.mrb[0].mxu1 %vm66_vm1, %v56_v16  ;;  %v3370_v42 = vpack.c.bf16 %v470_v40, %v469_v39  ;;  %v662_v47 = vld [vmem:[%s4333_s2 + $0x100] sm:$0xff]  ;;  %v2774_v49 = vld [vmem:[%s4333_s2 + $0x98] ss:$0 sm:$0xff]  ;;  %v663_v50 = vld [vmem:[%s4333_s2 + $0x108] sm:$0xff]  ;;  %v21_v40 = vadd.s32 16, %v3697_v28  ;;  %v837_v44 = vsub.s32 0, %v3697_v28 }
   0xc   :  { %3352 = vmatpush3.bf16.msra.mxu1 %v3349_v11  ;;  %3027 = vmatprep.mubr.msk.f32.mxu1 %vm66_vm1, %v140_v18  ;;  %vm233_vm2 = vcmp.eq.s32.totalorder %v3704_v30, %v232_v31  ;;  %v310_v36 = vadd.s32 1, %v232_v31  ;;  %v3381_v48 = vpack.c.bf16 %v662_v47, %v661_v46  ;;  %v664_v51 = vld [vmem:[%s4333_s2 + $0x110] sm:$0xff]  ;;  %v2776_v60 = vld [vmem:[%s4333_s2 + $0xc0] ss:$0 sm:$0xff]  ;;  %v579_v11 = vld [vmem:[%s4333_s2 + $0xd8] sm:$0xff]  ;;  %vm26_vm6 = vcmp.ge.s32.totalorder %v3697_v28, %v25_v21  ;;  %p3582_p3 = por %p3581_p2, %p3580_p1 }
   0xd   :  { %3354 = vmatprep.subr.bf16.mxu1 %v3353_v17  ;;  %3368 = vmatpush3.bf16.msra.mxu0 %v3367_v22  ;;  %v2770_v38 = vsel %vm233_vm2, 1.0, %v3601_v6  ;;  %v3385_v55 = vpack.c.bf16 %v664_v51, %v663_v50  ;;  %v580_v12 = vld [vmem:[%s4333_s2 + $0xe0] sm:$0xff]  ;;  %v581_v14 = vld [vmem:[%s4333_s2 + $0xe8] sm:$0xff]  ;;  %v582_v15 = vld [vmem:[%s4333_s2 + $0xf0] sm:$0xff]  ;;  %v30_v22 = vadd.s32 1, %v3704_v30  ;;  %vm27_vm7 = vcmp.ge.s32.totalorder %v20_v20, %v25_v21 }
   0xe   :  { %3375 = vmatprep.subr.bf16.mxu0 %v3599_v3  ;;  %vm311_vm4 = vcmp.eq.s32.totalorder %v3704_v30, %v310_v36  ;;  %v3376_v13 = vpack.c.bf16 %v580_v12, %v579_v11  ;;  %v3379_v16 = vpack.c.bf16 %v582_v15, %v581_v14  ;;  %v752_v18 = vld [vmem:[%s4333_s2 + $0x120] sm:$0xff]  ;;  %v754_v36 = vld [vmem:[%s4333_s2 + $0x130] sm:$0xff]  ;;  %vm28_vm13 = vcmp.ge.s32.totalorder %v21_v40, %v25_v21  ;;  %v2780_v43 = vld [vmem:[%s4333_s2 + $0x138] ss:$0 sm:$0xff]  ;;  %p3583_p4 = pnand %p3582_p3, %p3576_p0 }
   0xf   :  { %v2772_v41 = vsel %vm311_vm4, 1.0, %v3601_v6  ;;  %v2782_v46 = vld [vmem:[%s4333_s2 + $0x140] ss:$0 sm:$0xff] }
  0x10   :  { %3356 = vmatpush3.bf16.msra.mxu1 %v3353_v17  ;;  %v751_v17 = vld [vmem:[%s4333_s2 + $0x118] sm:$0xff] }
  0x11   :  { %3357 = vmatprep.subr.bf16.mxu1 %v3599_v3 }
  0x13   :  { %3028 = vmatmul.mubr.msk.f32.vlgmr.msra.gmra.mrb[2].mxu1 %vm66_vm1, %v141_v19  ;;  %v3389_v19 = vpack.c.bf16 %v752_v18, %v751_v17 }
  0x14   :  { %3034 = vmatprep.mubr.msk.f32.mxu1 %vm3600_vm0, %v3601_v6 }
  0xde   :  { %v136_v25 = vpop.f32.mrb[0].mxu1 }
  0xdf   :  { %v3693_v26 = vadd.f32 %v2765_v23, %v136_v25  ;;  %v3018_v27 = vpop.f32.mrb[1].mxu1  ;;  %v31_v23 = vmul.u32 4, %v30_v22  ;;  %v3602_v25 = vmov 1.0|1.0  }
  0xe1   :  { %3053 = vmatmul.mubr.msk.f32.vlgmr.msra.gmra.mrb[0].mxu0 %vm66_vm1, %v3693_v26  ;;  %vm32_vm8 = vcmp.lt.s32.totalorder %v3697_v28, %v31_v23  ;;  %vm33_vm9 = vcmp.lt.s32.totalorder %v20_v20, %v31_v23  ;;  %vm34_vm15 = vcmp.lt.s32.totalorder %v21_v40, %v31_v23 }
  0xe2   :  { %3074 = vmatprep.mubr.msk.f32.mxu0 %vm3600_vm0, %v3601_v6  ;;  %3377 = vmatpush3.bf16.msra.mxu0 %v3376_v13  ;;  %vm36_vm10 = vmand %vm26_vm6, %vm32_vm8 }
  0xe3   :  { %3378 = vmatprep.subr.bf16.mxu0 %v3599_v3  ;;  %vm37_vm11 = vmand %vm27_vm7, %vm33_vm9 }
  0xe4   :  { %vm3791_vm12 = vmpackc.low %vm37_vm11, %vm36_vm10  ;;  %vm914_vm10 = vcmask 64512   ;;  %vm1194_vm11 = vcmask 1040384  }
  0xe6   :  { %v3029_v32 = vpop.f32.mrb[2].mxu1  ;;  %3380 = vmatpush3.bf16.msra.mxu0 %v3379_v16 }
  0xe7   :  { %v229_v33 = vadd.f32 %v3029_v32, %v2767_v29  ;;  %v223_v34 = vpop.f32.mrb[3].mxu1  ;;  %3390 = vmatprep.subr.bf16.mxu0 %v3389_v19  ;;  %v2778_v32 = vld [vmem:[%s4333_s2 + $0xc8] ss:$0 sm:$0xff] }
  0xe8   :  { %v224_v35 = vadd.f32 %v2767_v29, %v223_v34  ;;  %v2779_v34 = vld [vmem:[%s4333_s2 + $0xd0] ss:$0 sm:$0xff] }
  0xea   :  { %v3358_v37 = vpack.c.bf16 %v229_v33, %v224_v35  ;;  %v753_v35 = vld [vmem:[%s4333_s2 + $0x128] sm:$0xff] }
  0xeb   :  { %v3393_v39 = vpack.c.bf16 %v754_v36, %v753_v35 }
  0xec   :  { %3359 = vmatpush3.bf16.msra.mxu1 %v3358_v37 }
  0xed   :  { %3360 = vmatprep.subr.bf16.mxu1 %v3599_v3 }
  0xef   :  { %3035 = vmatmul.mubr.msk.f32.vlgmr.msra.gmra.mrb[4].mxu1 %vm236_vm3, %v2770_v38 }
  0xf0   :  { %3362 = vmatpush3.bf16.msra.mxu1 %v3358_v37  ;;  %3041 = vmatprep.mubr.msk.f32.mxu1 %vm3600_vm0, %v3601_v6 }
  0xf1   :  { %3369 = vmatprep.subr.bf16.mxu1 %v3599_v3 }
  0xf3   :  { %3042 = vmatmul.mubr.msk.f32.vlgmr.msra.gmra.mrb[6].mxu1 %vm236_vm3, %v2772_v41  ;;  %v22_v41 = vadd.s32 24, %v3697_v28  ;;  %vm38_vm3 = vmand %vm28_vm13, %vm34_vm15 }
  0xf4   :  { %3371 = vmatpush3.bf16.msra.mxu1 %v3370_v42  ;;  %3063 = vmatprep.mubr.msk.f32.mxu1 %vm3600_vm0, %v3601_v6 }
  0xf5   :  { %3372 = vmatprep.subr.bf16.mxu1 %v3599_v3  ;;  %vm29_vm14 = vcmp.ge.s32.totalorder %v22_v41, %v25_v21  ;;  %vm35_vm2 = vcmp.lt.s32.totalorder %v22_v41, %v31_v23 }
  0xf6   :  { %vm39_vm4 = vmand %vm29_vm14, %vm35_vm2 }
  0xf7   :  { %vm3824_vm6 = vmpackc.low %vm39_vm4, %vm38_vm3 }
  0xf8   :  { %3374 = vmatpush3.bf16.msra.mxu1 %v3373_v45  ;;  %v1017_v45 = vsub.s32 1, %v3697_v28 }
  0xf9   :  { %3382 = vmatprep.subr.bf16.mxu1 %v3381_v48 }
 0x1b4   :  { %v465_v52 = vpop.f32.mrb[0].mxu0 }
 0x1b5   :  { %v466_v53 = vadd.f32 %v2774_v49, %v465_v52  ;;  %v3054_v54 = vpop.f32.mrb[1].mxu0 }
 0x1b7   :  { %3064 = vmatmul.mubr.msk.f32.vlgmr.msra.gmra.mrb[8].mxu1 %vm66_vm1, %v466_v53 }
 0x1b8   :  { %3384 = vmatpush3.bf16.msra.mxu1 %v3381_v48 }
 0x1b9   :  { %3386 = vmatprep.subr.bf16.mxu1 %v3385_v55 }
 0x1bc   :  { %3388 = vmatpush3.bf16.msra.mxu1 %v3385_v55 }
 0x1bd   :  { %3397 = vmatprep.subr.bf16.mxu1 %v3599_v3 }
 0x1c2   :  { %v3747_v56 = vpop.f32.mrb[4].mxu1 }
 0x1c3   :  { %v3036_v57 = vpop.f32.mrb[5].mxu1  ;;  %3085 = vmatprep.mubr.msk.f32.mxu1 %vm66_vm1, %v3747_v56 }
 0x1c6   :  { %v3751_v58 = vpop.f32.mrb[6].mxu1 }
 0x1c7   :  { %v3043_v59 = vpop.f32.mrb[7].mxu1  ;;  %3086 = vmatmul.mubr.msk.f32.vlgmr.msra.gmra.mrb[10].mxu1 %vm66_vm1, %v3751_v58 }
 0x1c8   :  { %3107 = vmatprep.mubr.msk.f32.mxu1 %vm3600_vm0, %v3601_v6  ;;  %3399 = vmatpush3.bf16.msk.msra.mxu1 %vm3791_vm12, %v3602_v25 }
 0x1c9   :  { %3400 = vmatprep.subr.bf16.mxu1 %v3599_v3 }
 0x1cc   :  { %3402 = vmatpush3.bf16.msk.msra.mxu1 %vm3824_vm6, %v3602_v25 }
 0x1cd   :  { %3403 = vmatprep.subr.bf16.mxu1 %v3599_v3 }
 0x28a   :  { %v547_v61 = vpop.f32.mrb[8].mxu1 }
 0x28b   :  { %v548_v62 = vadd.f32 %v2776_v60, %v547_v61  ;;  %v3065_v63 = vpop.f32.mrb[9].mxu1  ;;  %v50_v60 = vadd.s32 1, %v3697_v28  ;;  %v48_v61 = vmul.u32 4, %v3697_v28 }
 0x28c   :  { %v2330_v63 = vld [vmem:[%s4333_s2 + $0x300] sm:$0xff] }
 0x28d   :  { %v551_v0 = vadd.f32 %v548_v62, %v3693_v26  ;;  %v51_v62 = vmul.u32 4, %v50_v60  ;;  %vm49_vm7 = vcmp.ge.s32.totalorder %v3704_v30, %v48_v61  ;;  %v1198_v61 = vld [vmem:[%s4333_s2 + $0x160] sm:$0xff] }
 0x28f   :  { %v555_v1 = vsel %vm554_vm5, %v551_v0, 0.0  ;;  %vm52_vm8 = vcmp.lt.s32.totalorder %v3704_v30, %v51_v62  ;;  %v1199_v62 = vld [vmem:[%s4333_s2 + $0x168] sm:$0xff] }
 0x290   :  { %556 = vadd.xlane.f32.xlu0 %v555_v1  ;;  %vm3868_vm9 = vmand %vm49_vm7, %vm52_vm8 }
 0x29a   :  { %v3762_v2 = vpop.f32.mrb[10].mxu1 }
 0x29b   :  { %v3764_v4 = vpop.f32.mrb[11].mxu1  ;;  %v748_v50 = vadd.f32 %v3762_v2, %v2782_v46 }
 0x29c   :  { %v743_v51 = vadd.f32 %v2782_v46, %v3764_v4 }
 0x31d   :  { %v557_v5 = vpop.xlane.xlu0 %556 }
 0x31e   :  { %v559_v7 = vmul.f32 0.03125, %v557_v5 }
 0x320   :  { %v560_v8 = vsub.f32 %v551_v0, %v559_v7  ;;  %v3603_v0 = vmov 1.0  }
 0x322   :  { %v561_v9 = vmul.f32 %v560_v8, %v560_v8 }
 0x324   :  { %v562_v10 = vsel %vm554_vm5, %v561_v9, 0.0 }
 0x325   :  { %563 = vadd.xlane.f32.xlu0 %v562_v10 }
 0x3b2   :  { %v564_v26 = vpop.xlane.xlu0 %563 }
 0x3b3   :  { %v565_v27 = vmul.f32 0.03125, %v564_v26 }
 0x3b5   :  { %v566_v29 = vadd.f32 1e-05, %v565_v27 }
 0x3b7   :  { %3539 = vrsqrt.f32 %v566_v29 }
 0x3c1   :  { %v3540_v31 = vpop.eup %3539 }
 0x3c2   :  { %v568_v33 = vmul.f32 %v3540_v31, %v560_v8 }
 0x3c4   :  { %v573_v37 = vmul.f32 %v2778_v32, %v568_v33 }
 0x3c6   :  { %v3811_v38 = vadd.f32 %v2779_v34, %v573_v37 }
 0x3c8   :  { %3075 = vmatmul.mubr.msk.f32.vlgmr.msra.gmra.mrb[2].mxu0 %vm66_vm1, %v3811_v38 }
 0x3c9   :  { %3392 = vmatpush3.bf16.msra.mxu0 %v3389_v19  ;;  %3096 = vmatprep.mubr.msk.f32.mxu0 %vm66_vm1, %v3747_v56 }
 0x3ca   :  { %3394 = vmatprep.subr.bf16.mxu0 %v3393_v39 }
 0x3cd   :  { %3396 = vmatpush3.bf16.msra.mxu0 %v3393_v39 }
 0x3ce   :  { %3110 = vmatprep.subr.mxu0 %v3601_v6 }
 0x3d0   :  { %3097 = vmatmul.mubr.msk.f32.vlgmr.msra.gmra.mrb[4].mxu0 %vm66_vm1, %v3751_v58 }
 0x3d1   :  { %3112 = vmatprep.mubr.msk.f32.mxu0 %vm3600_vm0, %v3601_v6  ;;  %3111 = vmatpush3.msk.msra.mxu0 %vm3868_vm9, %v3603_v0 }
 0x3d2   :  { %3126 = vmatprep.subr.mxu0 %v3601_v6 }
 0x49b   :  { %v657_v47 = vpop.f32.mrb[2].mxu0 }
 0x49c   :  { %v658_v48 = vadd.f32 %v2780_v43, %v657_v47  ;;  %v3076_v49 = vpop.f32.mrb[3].mxu0 }
 0x49e   :  { %v838_v52 = vrot.slane %v658_v48, %v837_v44  ;;  %v1018_v53 = vrot.slane %v658_v48, %v1017_v45 }
 0x4a0   :  { %v839_v54 = vmul.f32 %v838_v52, %v743_v51  ;;  %v1019_v55 = vmul.f32 %v1018_v53, %v748_v50 }
 0x4a2   :  { %3108 = vmatmul.mubr.msk.f32.vlgmr.msra.gmra.mrb[12].mxu1 %vm66_vm1, %v839_v54  ;;  %v1196_v54 = vld [vmem:[%s4333_s2 + $0x150] sm:$0xff] }
 0x4a3   :  { %v3847_v57 = vpop.f32.mrb[4].mxu0  ;;  %3405 = vmatpush3.bf16.msk.msra.mxu1 %vm3791_vm12, %v3602_v25  ;;  %3123 = vmatprep.mubr.msk.f32.mxu1 %vm3600_vm0, %v3601_v6 }
 0x4a4   :  { %v3854_v59 = vpop.f32.mrb[5].mxu0  ;;  %3406 = vmatprep.subr.bf16.mxu1 %v3599_v3 }
 0x4a7   :  { %3408 = vmatpush3.bf16.msk.msra.mxu1 %vm3824_vm6, %v3602_v25 }
 0x4a8   :  { %3415 = vmatprep.subr.bf16.mxu1 %v3599_v3 }
 0x4aa   :  { %3124 = vmatmul.mubr.msk.f32.vlgmr.msra.gmra.mrb[14].mxu1 %vm66_vm1, %v1019_v55  ;;  %v1197_v55 = vld [vmem:[%s4333_s2 + $0x158] sm:$0xff] }
 0x4ab   :  { %3150 = vmatprep.mubr.msk.f32.mxu1 %vm3600_vm0, %v3601_v6  ;;  %v3410_v60 = vpack.c.bf16 %v1197_v55, %v1196_v54  ;;  %v2805_v55 = vld [vmem:[%s4333_s2 + $0x180] ss:$0 sm:$0xff] }
 0x575   :  { %v909_v1 = vpop.f32.mrb[12].mxu1 }
 0x576   :  { %v913_v2 = vmul.f32 0.5, %v909_v1  ;;  %v3109_v4 = vpop.f32.mrb[13].mxu1  ;;  %v3413_v1 = vpack.c.bf16 %v1199_v62, %v1198_v61  ;;  %v1413_v62 = vld [vmem:[%s4333_s2 + $0x188] sm:$0xff] }
 0x578   :  { %v915_v5 = vsel %vm914_vm10, %v913_v2, -inf }
 0x579   :  { %v916_v7 = vrot.slane %v915_v5, 4 }
 0x57b   :  { %v917_v8 = vmax.f32 %v915_v5, %v916_v7 }
 0x57d   :  { %v918_v30 = vrot.slane %v917_v8, 2  ;;  %v1089_v9 = vpop.f32.mrb[14].mxu1 }
 0x57e   :  { %v1093_v10 = vmul.f32 0.5, %v1089_v9  ;;  %v3125_v11 = vpop.f32.mrb[15].mxu1 }
 0x57f   :  { %v919_v12 = vmax.f32 %v917_v8, %v918_v30 }
 0x580   :  { %v1094_v13 = vsel %vm914_vm10, %v1093_v10, -inf }
 0x581   :  { %v920_v14 = vrot.slane %v919_v12, 1  ;;  %v1095_v15 = vrot.slane %v1094_v13, 4 }
 0x583   :  { %v921_v16 = vmax.f32 %v919_v12, %v920_v14  ;;  %v1096_v17 = vmax.f32 %v1094_v13, %v1095_v15 }
 0x585   :  { %v922_v18 = vsub.f32 %v913_v2, %v921_v16  ;;  %v1097_v19 = vrot.slane %v1096_v17, 2  ;;  %v2785_v2 = vld [vmem:[%s4333_s2 + $0x148] ss:$0 sm:$0xff] }
 0x586   :  { %v827_v4 = vadd.f32 %v2785_v2, %v3854_v59  ;;  %v832_v11 = vadd.f32 %v3847_v57, %v2785_v2  ;;  %v2802_v57 = vld [vmem:[%s4333_s2 + $0x170] ss:$0 sm:$0xff] }
 0x587   :  { %v923_v20 = vmul.f32 1.442695, %v922_v18  ;;  %v1098_v21 = vmax.f32 %v1096_v17, %v1097_v19 }
 0x589   :  { %3541 = vpow2.f32 %v923_v20  ;;  %v1099_v22 = vrot.slane %v1098_v21, 1 }
 0x58b   :  { %v1100_v23 = vmax.f32 %v1098_v21, %v1099_v22 }
 0x58d   :  { %v1101_v26 = vsub.f32 %v1093_v10, %v1100_v23 }
 0x58f   :  { %v1102_v27 = vmul.f32 1.442695, %v1101_v26 }
 0x591   :  { %3543 = vpow2.f32 %v1102_v27 }
 0x593   :  { %v3542_v29 = vpop.eup %3541 }
 0x594   :  { %v925_v31 = vsel %vm914_vm10, %v3542_v29, 0.0 }
 0x595   :  { %v926_v32 = vrot.slane %v925_v31, 4 }
 0x597   :  { %v927_v33 = vadd.f32 %v926_v32, %v925_v31 }
 0x599   :  { %v928_v34 = vrot.slane %v927_v33, 2 }
 0x59b   :  { %v3544_v35 = vpop.eup %3543  ;;  %v929_v36 = vadd.f32 %v928_v34, %v927_v33 }
 0x59c   :  { %v1104_v37 = vsel %vm914_vm10, %v3544_v35, 0.0 }
 0x59d   :  { %v930_v39 = vrot.slane %v929_v36, 1  ;;  %v1105_v40 = vrot.slane %v1104_v37, 4 }
 0x59f   :  { %v931_v41 = vadd.f32 %v930_v39, %v929_v36  ;;  %v1106_v43 = vadd.f32 %v1105_v40, %v1104_v37 }
 0x5a1   :  { %3545 = vrcp.f32 %v931_v41  ;;  %v1107_v46 = vrot.slane %v1106_v43, 2  ;;  %v1304_v41 = vld [vmem:[%s4334_s3] sm:$0xff] }
 0x5a3   :  { %v1108_v47 = vadd.f32 %v1107_v46, %v1106_v43  ;;  %v1305_v43 = vld [vmem:[%s4334_s3 + $0x8] sm:$0xff] }
 0x5a4   :  { %v3416_v46 = vpack.c.bf16 %v1305_v43, %v1304_v41 }
 0x5a5   :  { %v1109_v48 = vrot.slane %v1108_v47, 1 }
 0x5a6   :  { %3417 = vmatpush3.bf16.msra.mxu1 %v3416_v46 }
 0x5a7   :  { %v1110_v49 = vadd.f32 %v1109_v48, %v1108_v47  ;;  %3418 = vmatprep.subr.bf16.mxu1 %v3599_v3  ;;  %v1307_v47 = vld [vmem:[%s4334_s3 + $0x18] sm:$0xff] }
 0x5a9   :  { %3547 = vrcp.f32 %v1110_v49 }
 0x5ab   :  { %v3546_v50 = vpop.eup %3545 }
 0x5ac   :  { %v933_v51 = vmul.f32 %v3546_v50, %v3542_v29 }
 0x5ae   :  { %3113 = vmatmul.mubr.msk.f32.vlgmr.msra.gmra.mrb[6].mxu0 %vm914_vm10, %v933_v51 }
 0x5af   :  { %3127 = vmatpush3.msk.msra.mxu0 %vm3868_vm9, %v3603_v0  ;;  %3128 = vmatprep.mubr.msk.f32.mxu0 %vm3600_vm0, %v3601_v6 }
 0x5b0   :  { %3409 = vmatprep.subr.bf16.mxu0 %v3599_v3 }
 0x5b3   :  { %v3548_v52 = vpop.eup %3547 }
 0x5b4   :  { %v1112_v53 = vmul.f32 %v3548_v52, %v3544_v35 }
 0x5b6   :  { %3129 = vmatmul.mubr.msk.f32.vlgmr.msra.gmra.mrb[8].mxu0 %vm914_vm10, %v1112_v53  ;;  %v2804_v53 = vld [vmem:[%s4333_s2 + $0x178] ss:$0 sm:$0xff] }
 0x5b7   :  { %3139 = vmatprep.mubr.msk.f32.mxu0 %vm3600_vm0, %v3601_v6  ;;  %3411 = vmatpush3.bf16.msra.mxu0 %v3410_v60 }
 0x5b8   :  { %3412 = vmatprep.subr.bf16.mxu0 %v3599_v3 }
 0x5bb   :  { %3414 = vmatpush3.bf16.msra.mxu0 %v3413_v1  ;;  %v1414_v1 = vld [vmem:[%s4333_s2 + $0x190] sm:$0xff] }
 0x5bc   :  { %3421 = vmatprep.subr.bf16.mxu0 %v3599_v3  ;;  %v3422_v2 = vpack.c.bf16 %v1414_v1, %v1413_v62 }
 0x681   :  { %v1003_v5 = vpop.f32.mrb[6].mxu0 }
 0x682   :  { %v1007_v7 = vmul.f32 %v1003_v5, %v827_v4  ;;  %v3114_v8 = vpop.f32.mrb[7].mxu0  ;;  %v1415_v4 = vld [vmem:[%s4333_s2 + $0x198] sm:$0xff]  ;;  %v1416_v5 = vld [vmem:[%s4333_s2 + $0x1a0] sm:$0xff] }
 0x683   :  { %v1417_v8 = vld [vmem:[%s4333_s2 + $0x1a8] sm:$0xff] }
 0x684   :  { %v1008_v30 = vsel %vm66_vm1, %v1007_v7, 0.0  ;;  %v3425_v7 = vpack.c.bf16 %v1416_v5, %v1415_v4  ;;  %v1889_v4 = vld [vmem:[%s4333_s2 + $0x2d8] sm:$0xff] }
 0x685   :  { %v1009_v9 = vrot.slane %v1008_v30, 4 }
 0x687   :  { %v1010_v10 = vadd.f32 %v1009_v9, %v1008_v30  ;;  %v1418_v30 = vld [vmem:[%s4333_s2 + $0x1b0] sm:$0xff] }
 0x688   :  { %v3428_v9 = vpack.c.bf16 %v1418_v30, %v1417_v8 }
 0x689   :  { %v1182_v12 = vpop.f32.mrb[8].mxu0  ;;  %v1011_v15 = vrot.slane %v1010_v10, 2 }
 0x68a   :  { %v1186_v13 = vmul.f32 %v1182_v12, %v832_v11  ;;  %v3130_v14 = vpop.f32.mrb[9].mxu0  ;;  %v1420_v11 = vld [vmem:[%s4333_s2 + $0x1c0] sm:$0xff] }
 0x68b   :  { %v1012_v18 = vadd.f32 %v1011_v15, %v1010_v10  ;;  %v1419_v10 = vld [vmem:[%s4333_s2 + $0x1b8] sm:$0xff]  ;;  %v1422_v14 = vld [vmem:[%s4333_s2 + $0x1d0] sm:$0xff] }
 0x68c   :  { %v1187_v16 = vsel %vm66_vm1, %v1186_v13, 0.0  ;;  %v3431_v12 = vpack.c.bf16 %v1420_v11, %v1419_v10  ;;  %v1421_v13 = vld [vmem:[%s4333_s2 + $0x1c8] sm:$0xff] }
 0x68d   :  { %v1188_v17 = vrot.slane %v1187_v16, 4  ;;  %v1013_v59 = vrot.slane %v1012_v18, 1  ;;  %v3434_v15 = vpack.c.bf16 %v1422_v14, %v1421_v13 }
 0x68f   :  { %v1189_v19 = vadd.f32 %v1188_v17, %v1187_v16  ;;  %v1014_v23 = vadd.f32 %v1013_v59, %v1012_v18  ;;  %v1423_v16 = vld [vmem:[%s4333_s2 + $0x1d8] sm:$0xff]  ;;  %v1424_v17 = vld [vmem:[%s4333_s2 + $0x1e0] sm:$0xff] }
 0x690   :  { %v3437_v18 = vpack.c.bf16 %v1424_v17, %v1423_v16 }
 0x691   :  { %v1190_v20 = vrot.slane %v1189_v19, 2 }
 0x693   :  { %v1191_v21 = vadd.f32 %v1190_v20, %v1189_v19  ;;  %v1425_v19 = vld [vmem:[%s4333_s2 + $0x1e8] sm:$0xff]  ;;  %v1426_v20 = vld [vmem:[%s4333_s2 + $0x1f0] sm:$0xff] }
 0x694   :  { %v3440_v59 = vpack.c.bf16 %v1426_v20, %v1425_v19 }
 0x695   :  { %v1192_v22 = vrot.slane %v1191_v21, 1 }
 0x697   :  { %v1193_v26 = vadd.f32 %v1192_v22, %v1191_v21  ;;  %v1427_v21 = vld [vmem:[%s4333_s2 + $0x1f8] sm:$0xff]  ;;  %v1428_v22 = vld [vmem:[%s4333_s2 + $0x200] sm:$0xff] }
 0x699   :  { %v1195_v27 = vsel %vm1194_vm11, %v1014_v23, %v1193_v26  ;;  %v3443_v23 = vpack.c.bf16 %v1428_v22, %v1427_v21  ;;  %v1886_v26 = vld [vmem:[%s4333_s2 + $0x2c0] sm:$0xff] }
 0x69a   :  { %3140 = vmatmul.mubr.msk.f32.vlgmr.msra.gmra.mrb[10].mxu0 %vm66_vm1, %v1195_v27  ;;  %v1887_v27 = vld [vmem:[%s4333_s2 + $0x2c8] sm:$0xff]  ;;  %v1530_v21 = vld [vmem:[%s4333_s2 + $0x220] sm:$0xff] }
 0x69b   :  { %3185 = vmatprep.mubr.msk.f32.mxu0 %vm3600_vm0, %v3601_v6  ;;  %3423 = vmatpush3.bf16.msra.mxu0 %v3422_v2  ;;  %v1888_v2 = vld [vmem:[%s4333_s2 + $0x2d0] sm:$0xff] }
 0x69c   :  { %3424 = vmatprep.subr.bf16.mxu0 %v3599_v3  ;;  %v3475_v30 = vpack.c.bf16 %v1889_v4, %v1888_v2 }
 0x69f   :  { %3426 = vmatpush3.bf16.msra.mxu0 %v3425_v7 }
 0x6a0   :  { %3427 = vmatprep.subr.bf16.mxu0 %v3599_v3 }
 0x6a3   :  { %3429 = vmatpush3.bf16.msra.mxu0 %v3428_v9  ;;  %v2808_v9 = vld [vmem:[%s4333_s2 + $0x208] ss:$0 sm:$0xff] }
 0x6a4   :  { %3430 = vmatprep.subr.bf16.mxu0 %v3599_v3 }
 0x6a7   :  { %3432 = vmatpush3.bf16.msra.mxu0 %v3431_v12 }
 0x6a8   :  { %3433 = vmatprep.subr.bf16.mxu0 %v3599_v3 }
 0x6ab   :  { %3435 = vmatpush3.bf16.msra.mxu0 %v3434_v15 }
 0x6ac   :  { %3436 = vmatprep.subr.bf16.mxu0 %v3599_v3 }
 0x6af   :  { %3438 = vmatpush3.bf16.msra.mxu0 %v3437_v18 }
 0x6b0   :  { %3439 = vmatprep.subr.bf16.mxu0 %v3599_v3 }
 0x6b3   :  { %3441 = vmatpush3.bf16.msra.mxu0 %v3440_v59 }
 0x6b4   :  { %3442 = vmatprep.subr.bf16.mxu0 %v3599_v3 }
 0x6b7   :  { %3444 = vmatpush3.bf16.msra.mxu0 %v3443_v23  ;;  %v1532_v23 = vld [vmem:[%s4333_s2 + $0x230] sm:$0xff] }
 0x76d   :  { %v1274_v29 = vpop.f32.mrb[10].mxu0 }
 0x76e   :  { %v1275_v31 = vadd.f32 %v2802_v57, %v1274_v29  ;;  %v3141_v32 = vpop.f32.mrb[11].mxu0  ;;  %v3471_v57 = vpack.c.bf16 %v1887_v27, %v1886_v26  ;;  %v2806_v29 = vld [vmem:[%s4334_s3 + $0x20] ss:$0 sm:$0xff]  ;;  %v1533_v26 = vld [vmem:[%s4333_s2 + $0x238] sm:$0xff] }
 0x76f   :  { %v3449_v27 = vpack.c.bf16 %v1533_v26, %v1532_v23  ;;  %v1805_v23 = vld [vmem:[%s4333_s2 + $0x2b8] sm:$0xff] }
 0x770   :  { %v1278_v33 = vadd.f32 %v1275_v31, %v3811_v38  ;;  %v1306_v38 = vld [vmem:[%s4334_s3 + $0x10] sm:$0xff]  ;;  %3472 = vmatprep.subr.bf16.mxu0 %v3471_v57 }
 0x771   :  { %v3419_v48 = vpack.c.bf16 %v1307_v47, %v1306_v38 }
 0x772   :  { %v1281_v34 = vsel %vm554_vm5, %v1278_v33, 0.0 }
 0x773   :  { %1282 = vadd.xlane.f32.xlu1 %v1281_v34  ;;  %3420 = vmatpush3.bf16.msra.mxu1 %v3419_v48 }
 0x774   :  { %3445 = vmatprep.subr.bf16.mxu1 %v3599_v3 }
 0x800   :  { %v1283_v35 = vpop.xlane.xlu1 %1282 }
 0x801   :  { %v1284_v36 = vmul.f32 0.03125, %v1283_v35 }
 0x803   :  { %v1285_v37 = vsub.f32 %v1278_v33, %v1284_v36 }
 0x805   :  { %v1286_v39 = vmul.f32 %v1285_v37, %v1285_v37 }
 0x807   :  { %v1287_v40 = vsel %vm554_vm5, %v1286_v39, 0.0 }
 0x808   :  { %1288 = vadd.xlane.f32.xlu1 %v1287_v40 }
 0x895   :  { %v1289_v49 = vpop.xlane.xlu1 %1288 }
 0x896   :  { %v1290_v50 = vmul.f32 0.03125, %v1289_v49 }
 0x898   :  { %v1291_v51 = vadd.f32 1e-05, %v1290_v50 }
 0x89a   :  { %3549 = vrsqrt.f32 %v1291_v51 }
 0x8a4   :  { %v3550_v52 = vpop.eup %3549 }
 0x8a5   :  { %v1293_v54 = vmul.f32 %v3550_v52, %v1285_v37 }
 0x8a7   :  { %v1298_v60 = vmul.f32 %v2804_v53, %v1293_v54 }
 0x8a9   :  { %v3941_v61 = vadd.f32 %v2805_v55, %v1298_v60 }
 0x8ab   :  { %3151 = vmatmul.mubr.msk.f32.vlgmr.msra.gmra.mrb[16].mxu1 %vm66_vm1, %v3941_v61 }
 0x8ac   :  { %3196 = vmatprep.mubr.msk.f32.mxu1 %vm3600_vm0, %v3601_v6 }
 0x97e   :  { %v1382_v31 = vpop.f32.mrb[16].mxu1 }
 0x97f   :  { %v1383_v32 = vadd.f32 %v2806_v29, %v1382_v31  ;;  %v3152_v33 = vpop.f32.mrb[17].mxu1 }
 0x980   :  { %v2809_v33 = vld [vmem:[%s4333_s2 + $0x210] ss:$0 sm:$0xff] }
 0x981   :  { %v1387_v34 = vmul.f32 0.70710677, %v1383_v32  ;;  %v1386_v5 = vmul.f32 0.5, %v1383_v32 }
 0x983   :  { %v1388_v35 = vand.u32 2147483647, %v1387_v34  ;;  %vm1408_vm13 = vcmp.lt.f32.partialorder %v1387_v34, 0.0 }
 0x985   :  { %v1389_v36 = vmul.f32 0.3275911, %v1388_v35  ;;  %v1402_v39 = vmul.f32 %v1388_v35, %v1388_v35  ;;  %v1612_v35 = vld [vmem:[%s4333_s2 + $0x248] sm:$0xff] }
 0x987   :  { %v1390_v37 = vadd.f32 1.0, %v1389_v36  ;;  %v1403_v41 = vsub.f32 0.0, %v1402_v39  ;;  %v1613_v36 = vld [vmem:[%s4333_s2 + $0x250] sm:$0xff] }
 0x989   :  { %3551 = vrcp.f32 %v1390_v37  ;;  %v1404_v38 = vmul.f32 1.442695, %v1403_v41  ;;  %v2810_v37 = vld [vmem:[%s4333_s2 + $0x218] ss:$0 sm:$0xff] }
 0x98b   :  { %3553 = vpow2.f32 %v1404_v38 }
 0x993   :  { %v3552_v40 = vpop.eup %3551 }
 0x994   :  { %v1393_v43 = vmul.f32 1.0614054, %v3552_v40 }
 0x995   :  { %v3554_v54 = vpop.eup %3553 }
 0x996   :  { %v1394_v46 = vadd.f32 -1.4531521, %v1393_v43  ;;  %v1614_v43 = vld [vmem:[%s4333_s2 + $0x258] sm:$0xff] }
 0x998   :  { %v1395_v47 = vmul.f32 %v3552_v40, %v1394_v46  ;;  %v1615_v46 = vld [vmem:[%s4333_s2 + $0x260] sm:$0xff] }
 0x999   :  { %v3455_v38 = vpack.c.bf16 %v1615_v46, %v1614_v43 }
 0x99a   :  { %v1396_v48 = vadd.f32 1.4214138, %v1395_v47  ;;  %v2811_v47 = vld [vmem:[%s4333_s2 + $0x240] ss:$0 sm:$0xff] }
 0x99c   :  { %v1397_v49 = vmul.f32 %v3552_v40, %v1396_v48 }
 0x99e   :  { %v1398_v50 = vadd.f32 -0.28449672, %v1397_v49 }
 0x9a0   :  { %v1399_v51 = vmul.f32 %v3552_v40, %v1398_v50 }
 0x9a2   :  { %v1400_v52 = vadd.f32 0.2548296, %v1399_v51  ;;  %v2813_v51 = vld [vmem:[%s4333_s2 + $0x268] ss:$0 sm:$0xff] }
 0x9a4   :  { %v1401_v53 = vmul.f32 %v3552_v40, %v1400_v52  ;;  %v3452_v40 = vpack.c.bf16 %v1613_v36, %v1612_v35 }
 0x9a6   :  { %v1406_v55 = vmul.f32 %v3554_v54, %v1401_v53 }
 0x9a8   :  { %v1407_v60 = vsub.f32 1.0, %v1406_v55 }
 0x9aa   :  { %v1409_v62 = vsub.f32 0.0, %v1407_v60 }
 0x9ac   :  { %v1410_v1 = vsel %vm1408_vm13, %v1409_v62, %v1407_v60 }
 0x9ad   :  { %v1411_v7 = vadd.f32 1.0, %v1410_v1 }
 0x9af   :  { %v1412_v8 = vmul.f32 %v1411_v7, %v1386_v5  ;;  %v1720_v7 = vld [vmem:[%s4333_s2 + $0x280] sm:$0xff] }
 0x9b1   :  { %3186 = vmatmul.mubr.f32.vlgmr.msra.gmra.mrb[12].mxu0 %v1412_v8  ;;  %v1721_v8 = vld [vmem:[%s4333_s2 + $0x288] sm:$0xff] }
 0x9b2   :  { %3474 = vmatpush3.bf16.msra.mxu0 %v3471_v57  ;;  %3240 = vmatprep.mubr.msk.f32.mxu0 %vm66_vm1, %v3747_v56 }
 0x9b3   :  { %3476 = vmatprep.subr.bf16.mxu0 %v3475_v30 }
 0x9b6   :  { %3478 = vmatpush3.bf16.msra.mxu0 %v3475_v30  ;;  %v3458_v30 = vpack.c.bf16 %v1721_v8, %v1720_v7 }
 0x9b7   :  { %3254 = vmatprep.subr.mxu0 %v3601_v6 }
 0x9b9   :  { %3241 = vmatmul.mubr.msk.f32.vlgmr.msra.gmra.mrb[14].mxu0 %vm66_vm1, %v3751_v58 }
 0x9ba   :  { %3255 = vmatpush3.msk.msra.mxu0 %vm3868_vm9, %v3603_v0  ;;  %3256 = vmatprep.mubr.msk.f32.mxu0 %vm3600_vm0, %v3601_v6 }
 0x9bb   :  { %3270 = vmatprep.subr.mxu0 %v3601_v6 }
 0xa84   :  { %v1500_v10 = vpop.f32.mrb[12].mxu0 }
 0xa85   :  { %v1501_v11 = vadd.f32 %v2808_v9, %v1500_v10  ;;  %v3187_v12 = vpop.f32.mrb[13].mxu0  ;;  %v1722_v9 = vld [vmem:[%s4333_s2 + $0x290] sm:$0xff]  ;;  %v1723_v10 = vld [vmem:[%s4333_s2 + $0x298] sm:$0xff] }
 0xa86   :  { %v3461_v12 = vpack.c.bf16 %v1723_v10, %v1722_v9 }
 0xa87   :  { %v1504_v13 = vadd.f32 %v1501_v11, %v3941_v61  ;;  %v1531_v61 = vld [vmem:[%s4333_s2 + $0x228] sm:$0xff]  ;;  %v1802_v11 = vld [vmem:[%s4333_s2 + $0x2a0] sm:$0xff] }
 0xa88   :  { %v3446_v22 = vpack.c.bf16 %v1531_v61, %v1530_v21  ;;  %v2816_v61 = vld [vmem:[%s4333_s2 + $0x278] ss:$0 sm:$0xff] }
 0xa89   :  { %v1507_v14 = vsel %vm554_vm5, %v1504_v13, 0.0 }
 0xa8a   :  { %1508 = vadd.xlane.f32.xlu0 %v1507_v14  ;;  %3447 = vmatpush3.bf16.msra.mxu1 %v3446_v22  ;;  %v1804_v22 = vld [vmem:[%s4333_s2 + $0x2b0] sm:$0xff] }
 0xa8b   :  { %3448 = vmatprep.subr.bf16.mxu1 %v3599_v3 }
 0xa8c   :  { %v4033_v15 = vpop.f32.mrb[14].mxu0 }
 0xa8d   :  { %v4035_v16 = vpop.f32.mrb[15].mxu0 }
 0xa8e   :  { %3450 = vmatpush3.bf16.msra.mxu1 %v3449_v27 }
 0xa8f   :  { %3451 = vmatprep.subr.bf16.mxu1 %v3599_v3 }
 0xb17   :  { %v1509_v17 = vpop.xlane.xlu0 %1508 }
 0xb18   :  { %v1510_v18 = vmul.f32 0.03125, %v1509_v17 }
 0xb1a   :  { %v1511_v19 = vsub.f32 %v1504_v13, %v1510_v18  ;;  %v1803_v13 = vld [vmem:[%s4333_s2 + $0x2a8] sm:$0xff] }
 0xb1b   :  { %v3463_v14 = vpack.c.bf16 %v1803_v13, %v1802_v11 }
 0xb1c   :  { %v1512_v20 = vmul.f32 %v1511_v19, %v1511_v19 }
 0xb1e   :  { %v1513_v59 = vsel %vm554_vm5, %v1512_v20, 0.0 }
 0xb1f   :  { %1514 = vadd.xlane.f32.xlu1 %v1513_v59  ;;  %v2815_v59 = vld [vmem:[%s4333_s2 + $0x270] ss:$0 sm:$0xff] }
 0xbac   :  { %v1515_v57 = vpop.xlane.xlu1 %1514 }
 0xbad   :  { %v1516_v29 = vmul.f32 0.03125, %v1515_v57  ;;  %v3467_v57 = vpack.c.bf16 %v1805_v23, %v1804_v22 }
 0xbaf   :  { %v1517_v31 = vadd.f32 1e-05, %v1516_v29 }
 0xbb1   :  { %3555 = vrsqrt.f32 %v1517_v31 }
 0xbbb   :  { %v3556_v32 = vpop.eup %3555 }
 0xbbc   :  { %v1519_v34 = vmul.f32 %v3556_v32, %v1511_v19  ;;  %v2819_v32 = vld [vmem:[%s4333_s2 + $0x2e8] ss:$0 sm:$0xff] }
 0xbbe   :  { %v1524_v39 = vmul.f32 %v2809_v33, %v1519_v34 }
 0xbc0   :  { %v1529_v41 = vadd.f32 %v2810_v37, %v1524_v39 }
 0xbc2   :  { %3197 = vmatmul.mubr.msk.f32.vlgmr.msra.gmra.mrb[18].mxu1 %vm66_vm1, %v1529_v41 }
 0xbc3   :  { %3453 = vmatpush3.bf16.msra.mxu1 %v3452_v40  ;;  %3207 = vmatprep.mubr.msk.f32.mxu1 %vm3600_vm0, %v3601_v6 }
 0xbc4   :  { %3454 = vmatprep.subr.bf16.mxu1 %v3599_v3 }
 0xbc7   :  { %3456 = vmatpush3.bf16.msra.mxu1 %v3455_v38 }
 0xbc8   :  { %3457 = vmatprep.subr.bf16.mxu1 %v3599_v3 }
 0xc95   :  { %v1608_v48 = vpop.f32.mrb[18].mxu1 }
 0xc96   :  { %v1609_v49 = vadd.f32 %v2811_v47, %v1608_v48  ;;  %v3198_v50 = vpop.f32.mrb[19].mxu1 }
 0xc98   :  { %3208 = vmatmul.mubr.msk.f32.vlgmr.msra.gmra.mrb[20].mxu1 %vm66_vm1, %v1609_v49 }
 0xc99   :  { %3218 = vmatprep.mubr.msk.f32.mxu1 %vm3600_vm0, %v3601_v6  ;;  %3459 = vmatpush3.bf16.msra.mxu1 %v3458_v30 }
 0xc9a   :  { %3460 = vmatprep.subr.bf16.mxu1 %v3599_v3 }
 0xc9d   :  { %3462 = vmatpush3.bf16.msra.mxu1 %v3461_v12 }
 0xc9e   :  { %3464 = vmatprep.subr.bf16.mxu1 %v3463_v14 }
 0xd6b   :  { %v1690_v52 = vpop.f32.mrb[20].mxu1 }
 0xd6c   :  { %v1691_v53 = vadd.f32 %v2813_v51, %v1690_v52  ;;  %v3209_v54 = vpop.f32.mrb[21].mxu1 }
 0xd6e   :  { %v1694_v55 = vadd.f32 %v1691_v53, %v1529_v41 }
 0xd70   :  { %v1697_v60 = vsel %vm554_vm5, %v1694_v55, 0.0 }
 0xd71   :  { %1698 = vadd.xlane.f32.xlu0 %v1697_v60 }
 0xdfe   :  { %v1699_v62 = vpop.xlane.xlu0 %1698 }
 0xdff   :  { %v1700_v1 = vmul.f32 0.03125, %v1699_v62 }
 0xe01   :  { %v1701_v2 = vsub.f32 %v1694_v55, %v1700_v1 }
 0xe03   :  { %v1702_v4 = vmul.f32 %v1701_v2, %v1701_v2 }
 0xe05   :  { %v1703_v5 = vsel %vm554_vm5, %v1702_v4, 0.0 }
 0xe06   :  { %1704 = vadd.xlane.f32.xlu1 %v1703_v5 }
 0xe93   :  { %v1705_v17 = vpop.xlane.xlu1 %1704 }
 0xe94   :  { %v1706_v18 = vmul.f32 0.03125, %v1705_v17 }
 0xe96   :  { %v1707_v19 = vadd.f32 1e-05, %v1706_v18 }
 0xe98   :  { %3557 = vrsqrt.f32 %v1707_v19 }
 0xea2   :  { %v3558_v20 = vpop.eup %3557 }
 0xea3   :  { %v1709_v21 = vmul.f32 %v3558_v20, %v1701_v2 }
 0xea5   :  { %v1714_v26 = vmul.f32 %v2815_v59, %v1709_v21 }
 0xea7   :  { %v4117_v27 = vadd.f32 %v2816_v61, %v1714_v26 }
 0xea9   :  { %3219 = vmatmul.mubr.msk.f32.vlgmr.msra.gmra.mrb[22].mxu1 %vm66_vm1, %v4117_v27 }
 0xeaa   :  { %3466 = vmatpush3.bf16.msra.mxu1 %v3463_v14  ;;  %3229 = vmatprep.mubr.msk.f32.mxu1 %vm66_vm1, %v3747_v56 }
 0xeab   :  { %3468 = vmatprep.subr.bf16.mxu1 %v3467_v57 }
 0xeae   :  { %3470 = vmatpush3.bf16.msra.mxu1 %v3467_v57 }
 0xeaf   :  { %3479 = vmatprep.subr.bf16.mxu1 %v3599_v3 }
 0xeb1   :  { %3230 = vmatmul.mubr.msk.f32.vlgmr.msra.gmra.mrb[24].mxu1 %vm66_vm1, %v3751_v58  ;;  %v2817_v58 = vld [vmem:[%s4333_s2 + $0x2e0] ss:$0 sm:$0xff] }
 0xeb2   :  { %3481 = vmatpush3.bf16.msk.msra.mxu1 %vm3791_vm12, %v3602_v25  ;;  %3251 = vmatprep.mubr.msk.f32.mxu1 %vm3600_vm0, %v3601_v6 }
 0xeb3   :  { %3482 = vmatprep.subr.bf16.mxu1 %v3599_v3 }
 0xeb6   :  { %3484 = vmatpush3.bf16.msk.msra.mxu1 %vm3824_vm6, %v3602_v25 }
 0xeb7   :  { %3485 = vmatprep.subr.bf16.mxu1 %v3599_v3 }
 0xf7c   :  { %v1798_v56 = vpop.f32.mrb[22].mxu1 }
 0xf7d   :  { %v3220_v29 = vpop.f32.mrb[23].mxu1  ;;  %v1799_v31 = vadd.f32 %v2817_v58, %v1798_v56  ;;  %v2329_v56 = vld [vmem:[%s4333_s2 + $0x2f8] sm:$0xff]  ;;  %v2332_v58 = vld [vmem:[%s4333_s2 + $0x310] sm:$0xff] }
 0xf7e   :  { %v2331_v29 = vld [vmem:[%s4333_s2 + $0x308] sm:$0xff] }
 0xf7f   :  { %v2152_v34 = vrot.slane %v1799_v31, %v1017_v45  ;;  %v1973_v37 = vrot.slane %v1799_v31, %v837_v44  ;;  %v3495_v31 = vpack.c.bf16 %v2332_v58, %v2331_v29  ;;  %v2553_v29 = vld [vmem:[%s4333_s2 + $0x368] sm:$0xff] }
 0xf84   :  { %v3231_v33 = vpop.f32.mrb[24].mxu1 }
 0xf85   :  { %v1883_v35 = vadd.f32 %v3231_v33, %v2819_v32  ;;  %v1877_v36 = vpop.f32.mrb[25].mxu1 }
 0xf86   :  { %v1878_v39 = vadd.f32 %v2819_v32, %v1877_v36  ;;  %v2822_v32 = vld [vmem:[%s4333_s2 + $0x2f0] ss:$0 sm:$0xff] }
 0xf87   :  { %v2153_v40 = vmul.f32 %v2152_v34, %v1883_v35  ;;  %v1962_v33 = vadd.f32 %v2822_v32, %v4035_v16 }
 0xf88   :  { %v1974_v41 = vmul.f32 %v1973_v37, %v1878_v39 }
 0xf8a   :  { %3252 = vmatmul.mubr.msk.f32.vlgmr.msra.gmra.mrb[26].mxu1 %vm66_vm1, %v1974_v41  ;;  %v1967_v41 = vadd.f32 %v4033_v15, %v2822_v32  ;;  %v2839_v15 = vld [vmem:[%s4333_s2 + $0x318] ss:$0 sm:$0xff] }
 0xf8b   :  { %3487 = vmatpush3.bf16.msk.msra.mxu1 %vm3791_vm12, %v3602_v25  ;;  %3267 = vmatprep.mubr.msk.f32.mxu1 %vm3600_vm0, %v3601_v6  ;;  %v2555_v32 = vld [vmem:[%s4333_s2 + $0x378] sm:$0xff] }
 0xf8c   :  { %3488 = vmatprep.subr.bf16.mxu1 %v3599_v3 }
 0xf8f   :  { %3490 = vmatpush3.bf16.msk.msra.mxu1 %vm3824_vm6, %v3602_v25 }
 0xf90   :  { %3497 = vmatprep.subr.bf16.mxu1 %v3599_v3 }
 0xf92   :  { %3268 = vmatmul.mubr.msk.f32.vlgmr.msra.gmra.mrb[28].mxu1 %vm66_vm1, %v2153_v40 }
 0xf93   :  { %3294 = vmatprep.mubr.msk.f32.mxu1 %vm3600_vm0, %v3601_v6 }
0x105d   :  { %v2044_v28 = vpop.f32.mrb[26].mxu1 }
0x105e   :  { %v2048_v44 = vmul.f32 0.5, %v2044_v28  ;;  %v3253_v24 = vpop.f32.mrb[27].mxu1 }
0x1060   :  { %v2049_v45 = vsel %vm914_vm10, %v2048_v44, -inf }
0x1061   :  { %v2050_v43 = vrot.slane %v2049_v45, 4 }
0x1063   :  { %v2051_v46 = vmax.f32 %v2049_v45, %v2050_v43 }
0x1065   :  { %v2052_v38 = vrot.slane %v2051_v46, 2  ;;  %v2223_v47 = vpop.f32.mrb[28].mxu1 }
0x1066   :  { %v2227_v48 = vmul.f32 0.5, %v2223_v47  ;;  %v3269_v49 = vpop.f32.mrb[29].mxu1 }
0x1067   :  { %v2053_v42 = vmax.f32 %v2051_v46, %v2052_v38 }
0x1068   :  { %v2228_v25 = vsel %vm914_vm10, %v2227_v48, -inf }
0x1069   :  { %v2054_v50 = vrot.slane %v2053_v42, 1  ;;  %v2229_v51 = vrot.slane %v2228_v25, 4 }
0x106b   :  { %v2055_v52 = vmax.f32 %v2053_v42, %v2054_v50  ;;  %v2230_v53 = vmax.f32 %v2228_v25, %v2229_v51 }
0x106d   :  { %v2056_v54 = vsub.f32 %v2048_v44, %v2055_v52  ;;  %v2231_v55 = vrot.slane %v2230_v53, 2 }
0x106f   :  { %v2057_v60 = vmul.f32 1.442695, %v2056_v54  ;;  %v2232_v62 = vmax.f32 %v2230_v53, %v2231_v55 }
0x1071   :  { %3559 = vpow2.f32 %v2057_v60  ;;  %v2233_v1 = vrot.slane %v2232_v62, 1 }
0x1073   :  { %v2234_v2 = vmax.f32 %v2232_v62, %v2233_v1 }
0x1075   :  { %v2235_v4 = vsub.f32 %v2227_v48, %v2234_v2 }
0x1077   :  { %v2236_v5 = vmul.f32 1.442695, %v2235_v4 }
0x1079   :  { %3561 = vpow2.f32 %v2236_v5 }
0x107b   :  { %v3560_v7 = vpop.eup %3559 }
0x107c   :  { %v2059_v8 = vsel %vm914_vm10, %v3560_v7, 0.0 }
0x107d   :  { %v2060_v30 = vrot.slane %v2059_v8, 4 }
0x107f   :  { %v2061_v9 = vadd.f32 %v2060_v30, %v2059_v8  ;;  %v2438_v8 = vld [vmem:[%s4334_s3 + $0x30] sm:$0xff] }
0x1081   :  { %v2062_v10 = vrot.slane %v2061_v9, 2 }
0x1083   :  { %v3562_v11 = vpop.eup %3561  ;;  %v2063_v12 = vadd.f32 %v2062_v10, %v2061_v9  ;;  %v2440_v9 = vld [vmem:[%s4334_s3 + $0x40] sm:$0xff] }
0x1084   :  { %v2238_v13 = vsel %vm914_vm10, %v3562_v11, 0.0 }
0x1085   :  { %v2064_v14 = vrot.slane %v2063_v12, 1  ;;  %v2239_v17 = vrot.slane %v2238_v13, 4 }
0x1087   :  { %v2065_v18 = vadd.f32 %v2064_v14, %v2063_v12  ;;  %v2240_v19 = vadd.f32 %v2239_v17, %v2238_v13  ;;  %v2841_v17 = vld [vmem:[%s4333_s2 + $0x320] ss:$0 sm:$0xff] }
0x1089   :  { %3563 = vrcp.f32 %v2065_v18  ;;  %v2241_v20 = vrot.slane %v2240_v19, 2 }
0x108b   :  { %v2242_v59 = vadd.f32 %v2241_v20, %v2240_v19  ;;  %v2842_v19 = vld [vmem:[%s4333_s2 + $0x328] ss:$0 sm:$0xff] }
0x108d   :  { %v2243_v21 = vrot.slane %v2242_v59, 1 }
0x108f   :  { %v2244_v61 = vadd.f32 %v2243_v21, %v2242_v59  ;;  %v2546_v21 = vld [vmem:[%s4333_s2 + $0x330] sm:$0xff] }
0x1091   :  { %3565 = vrcp.f32 %v2244_v61  ;;  %v2547_v61 = vld [vmem:[%s4333_s2 + $0x338] sm:$0xff] }
0x1093   :  { %v3564_v22 = vpop.eup %3563 }
0x1094   :  { %v2067_v23 = vmul.f32 %v3564_v22, %v3560_v7  ;;  %v2437_v7 = vld [vmem:[%s4334_s3 + $0x28] sm:$0xff]  ;;  %v3504_v22 = vpack.c.bf16 %v2547_v61, %v2546_v21 }
0x1095   :  { %v3498_v30 = vpack.c.bf16 %v2438_v8, %v2437_v7 }
0x1096   :  { %3257 = vmatmul.mubr.msk.f32.vlgmr.msra.gmra.mrb[16].mxu0 %vm914_vm10, %v2067_v23  ;;  %v2548_v23 = vld [vmem:[%s4333_s2 + $0x340] sm:$0xff] }
0x1097   :  { %3271 = vmatpush3.msk.msra.mxu0 %vm3868_vm9, %v3603_v0  ;;  %3272 = vmatprep.mubr.msk.f32.mxu0 %vm3600_vm0, %v3601_v6  ;;  %v3492_v0 = vpack.c.bf16 %v2330_v63, %v2329_v56  ;;  %v2551_v56 = vld [vmem:[%s4333_s2 + $0x358] sm:$0xff] }
0x1098   :  { %3491 = vmatprep.subr.bf16.mxu0 %v3599_v3  ;;  %3499 = vmatpush3.bf16.msra.mxu1 %v3498_v30 }
0x1099   :  { %3500 = vmatprep.subr.bf16.mxu1 %v3599_v3 }
0x109b   :  { %v3566_v26 = vpop.eup %3565 }
0x109c   :  { %v2246_v57 = vmul.f32 %v3566_v26, %v3562_v11 }
0x109e   :  { %3273 = vmatmul.mubr.msk.f32.vlgmr.msra.gmra.mrb[18].mxu0 %vm914_vm10, %v2246_v57  ;;  %v2550_v57 = vld [vmem:[%s4333_s2 + $0x350] sm:$0xff] }
0x109f   :  { %3283 = vmatprep.mubr.msk.f32.mxu0 %vm3600_vm0, %v3601_v6  ;;  %3493 = vmatpush3.bf16.msra.mxu0 %v3492_v0  ;;  %v3510_v63 = vpack.c.bf16 %v2551_v56, %v2550_v57  ;;  %v2552_v0 = vld [vmem:[%s4333_s2 + $0x360] sm:$0xff] }
0x10a0   :  { %3494 = vmatprep.subr.bf16.mxu0 %v3599_v3  ;;  %v3513_v58 = vpack.c.bf16 %v2553_v29, %v2552_v0 }
0x10a3   :  { %3496 = vmatpush3.bf16.msra.mxu0 %v3495_v31  ;;  %v2554_v31 = vld [vmem:[%s4333_s2 + $0x370] sm:$0xff] }
0x10a4   :  { %3503 = vmatprep.subr.bf16.mxu0 %v3599_v3 }
0x1169   :  { %v2137_v34 = vpop.f32.mrb[16].mxu0 }
0x116a   :  { %v2141_v35 = vmul.f32 %v2137_v34, %v1962_v33  ;;  %v3258_v36 = vpop.f32.mrb[17].mxu0  ;;  %v3516_v33 = vpack.c.bf16 %v2555_v32, %v2554_v31  ;;  %v2556_v34 = vld [vmem:[%s4333_s2 + $0x380] sm:$0xff] }
0x116b   :  { %v2847_v31 = vld [vmem:[%s4333_s2 + $0x3c0] ss:$0 sm:$0xff] }
0x116c   :  { %v2142_v37 = vsel %vm66_vm1, %v2141_v35, 0.0  ;;  %v2557_v35 = vld [vmem:[%s4333_s2 + $0x388] sm:$0xff] }
0x116d   :  { %v2143_v39 = vrot.slane %v2142_v37, 4  ;;  %v3519_v36 = vpack.c.bf16 %v2557_v35, %v2556_v34  ;;  %v2848_v34 = vld [vmem:[%s4333_s2 + $0x70] ss:$0 sm:$0xff] }
0x116f   :  { %v2144_v40 = vadd.f32 %v2143_v39, %v2142_v37  ;;  %v2558_v37 = vld [vmem:[%s4333_s2 + $0x390] sm:$0xff]  ;;  %v2559_v39 = vld [vmem:[%s4333_s2 + $0x398] sm:$0xff] }
0x1171   :  { %v2316_v28 = vpop.f32.mrb[18].mxu0  ;;  %v2145_v45 = vrot.slane %v2144_v40, 2 }
0x1172   :  { %v2320_v44 = vmul.f32 %v2316_v28, %v1967_v41  ;;  %v3274_v24 = vpop.f32.mrb[19].mxu0  ;;  %v2560_v41 = vld [vmem:[%s4333_s2 + $0x3a0] sm:$0xff]  ;;  %v2561_v28 = vld [vmem:[%s4333_s2 + $0x3a8] sm:$0xff] }
0x1173   :  { %v2146_v38 = vadd.f32 %v2145_v45, %v2144_v40  ;;  %v3522_v40 = vpack.c.bf16 %v2559_v39, %v2558_v37  ;;  %v2843_v24 = vld [vmem:[%s4334_s3 + $0x48] ss:$0 sm:$0xff] }
0x1174   :  { %v2321_v43 = vsel %vm66_vm1, %v2320_v44, 0.0  ;;  %v3525_v44 = vpack.c.bf16 %v2561_v28, %v2560_v41 }
0x1175   :  { %v2322_v46 = vrot.slane %v2321_v43, 4  ;;  %v2147_v16 = vrot.slane %v2146_v38, 1 }
0x1177   :  { %v2323_v47 = vadd.f32 %v2322_v46, %v2321_v43  ;;  %v2148_v25 = vadd.f32 %v2147_v16, %v2146_v38 }
0x1179   :  { %v2324_v48 = vrot.slane %v2323_v47, 2 }
0x117b   :  { %v2325_v49 = vadd.f32 %v2324_v48, %v2323_v47 }
0x117d   :  { %v2326_v42 = vrot.slane %v2325_v49, 1 }
0x117f   :  { %v2327_v50 = vadd.f32 %v2326_v42, %v2325_v49 }
0x1181   :  { %v2328_v51 = vsel %vm1194_vm11, %v2148_v25, %v2327_v50 }
0x1182   :  { %3284 = vmatmul.mubr.msk.f32.vlgmr.msra.gmra.mrb[20].mxu0 %vm66_vm1, %v2328_v51 }
0x1183   :  { %3329 = vmatprep.mubr.msk.f32.mxu0 %vm3600_vm0, %v3601_v6  ;;  %3505 = vmatpush3.bf16.msra.mxu0 %v3504_v22  ;;  %v2663_v22 = vld [vmem:[%s4333_s2 + $0x50] sm:$0xff] }
0x1184   :  { %3506 = vmatprep.subr.bf16.mxu0 %v3599_v3 }
0x1255   :  { %v2407_v52 = vpop.f32.mrb[20].mxu0 }
0x1256   :  { %v2408_v53 = vadd.f32 %v2839_v15, %v2407_v52  ;;  %v3285_v54 = vpop.f32.mrb[21].mxu0 }
0x1258   :  { %v2411_v55 = vadd.f32 %v2408_v53, %v4117_v27  ;;  %v2439_v27 = vld [vmem:[%s4334_s3 + $0x38] sm:$0xff] }
0x1259   :  { %v3501_v10 = vpack.c.bf16 %v2440_v9, %v2439_v27 }
0x125a   :  { %v2414_v60 = vsel %vm554_vm5, %v2411_v55, 0.0 }
0x125b   :  { %2415 = vadd.xlane.f32.xlu0 %v2414_v60  ;;  %3502 = vmatpush3.bf16.msra.mxu1 %v3501_v10  ;;  %v2845_v10 = vld [vmem:[%s4333_s2 + $0x3b0] ss:$0 sm:$0xff] }
0x125c   :  { %3527 = vmatprep.subr.bf16.mxu1 %v3599_v3 }
0x12e8   :  { %v2416_v62 = vpop.xlane.xlu0 %2415 }
0x12e9   :  { %v2417_v1 = vmul.f32 0.03125, %v2416_v62 }
0x12eb   :  { %v2418_v2 = vsub.f32 %v2411_v55, %v2417_v1 }
0x12ed   :  { %v2419_v4 = vmul.f32 %v2418_v2, %v2418_v2 }
0x12ef   :  { %v2420_v5 = vsel %vm554_vm5, %v2419_v4, 0.0 }
0x12f0   :  { %2421 = vadd.xlane.f32.xlu1 %v2420_v5 }
0x137d   :  { %v2422_v11 = vpop.xlane.xlu1 %2421 }
0x137e   :  { %v2423_v12 = vmul.f32 0.03125, %v2422_v11 }
0x1380   :  { %v2424_v13 = vadd.f32 1e-05, %v2423_v12 }
0x1382   :  { %3567 = vrsqrt.f32 %v2424_v13 }
0x138c   :  { %v3568_v14 = vpop.eup %3567 }
0x138d   :  { %v2426_v18 = vmul.f32 %v3568_v14, %v2418_v2 }
0x138f   :  { %v2431_v20 = vmul.f32 %v2841_v17, %v2426_v18 }
0x1391   :  { %v4225_v59 = vadd.f32 %v2842_v19, %v2431_v20 }
0x1393   :  { %3295 = vmatmul.mubr.msk.f32.vlgmr.msra.gmra.mrb[30].mxu1 %vm66_vm1, %v4225_v59 }
0x1394   :  { %3340 = vmatprep.mubr.msk.f32.mxu1 %vm3600_vm0, %v3601_v6  ;;  %v2549_v6 = vld [vmem:[%s4333_s2 + $0x348] sm:$0xff] }
0x1395   :  { %v3507_v26 = vpack.c.bf16 %v2549_v6, %v2548_v23  ;;  %v2664_v23 = vld [vmem:[%s4333_s2 + $0x58] sm:$0xff] }
0x1396   :  { %v3528_v6 = vpack.c.bf16 %v2664_v23, %v2663_v22 }
0x1397   :  { %3508 = vmatpush3.bf16.msra.mxu0 %v3507_v26  ;;  %v2666_v26 = vld [vmem:[%s4333_s2 + $0x68] sm:$0xff] }
0x1398   :  { %3509 = vmatprep.subr.bf16.mxu0 %v3599_v3  ;;  %3529 = vmatpush3.bf16.msra.mxu1 %v3528_v6 }
0x1399   :  { %3530 = vmatprep.subr.bf16.mxu1 %v3599_v3 }
0x139b   :  { %3511 = vmatpush3.bf16.msra.mxu0 %v3510_v63 }
0x139c   :  { %3512 = vmatprep.subr.bf16.mxu0 %v3599_v3 }
0x139f   :  { %3514 = vmatpush3.bf16.msra.mxu0 %v3513_v58  ;;  %v2846_v58 = vld [vmem:[%s4333_s2 + $0x3b8] ss:$0 sm:$0xff] }
0x13a0   :  { %3515 = vmatprep.subr.bf16.mxu0 %v3599_v3 }
0x13a3   :  { %3517 = vmatpush3.bf16.msra.mxu0 %v3516_v33 }
0x13a4   :  { %3518 = vmatprep.subr.bf16.mxu0 %v3599_v3 }
0x13a7   :  { %3520 = vmatpush3.bf16.msra.mxu0 %v3519_v36 }
0x13a8   :  { %3521 = vmatprep.subr.bf16.mxu0 %v3599_v3 }
0x13ab   :  { %3523 = vmatpush3.bf16.msra.mxu0 %v3522_v40 }
0x13ac   :  { %3524 = vmatprep.subr.bf16.mxu0 %v3599_v3 }
0x13af   :  { %3526 = vmatpush3.bf16.msra.mxu0 %v3525_v44 }
0x1466   :  { %v2515_v45 = vpop.f32.mrb[30].mxu1 }
0x1467   :  { %v2516_v43 = vadd.f32 %v2843_v24, %v2515_v45  ;;  %v3296_v46 = vpop.f32.mrb[31].mxu1 }
0x1469   :  { %v2520_v38 = vmul.f32 0.70710677, %v2516_v43  ;;  %v2519_v30 = vmul.f32 0.5, %v2516_v43 }
0x146b   :  { %v2521_v47 = vand.u32 2147483647, %v2520_v38  ;;  %vm2541_vm0 = vcmp.lt.f32.partialorder %v2520_v38, 0.0 }
0x146d   :  { %v2522_v48 = vmul.f32 0.3275911, %v2521_v47  ;;  %v2535_v49 = vmul.f32 %v2521_v47, %v2521_v47 }
0x146f   :  { %v2523_v16 = vadd.f32 1.0, %v2522_v48  ;;  %v2536_v25 = vsub.f32 0.0, %v2535_v49 }
0x1471   :  { %3569 = vrcp.f32 %v2523_v16  ;;  %v2537_v15 = vmul.f32 1.442695, %v2536_v25 }
0x1473   :  { %3571 = vpow2.f32 %v2537_v15 }
0x147b   :  { %v3570_v42 = vpop.eup %3569 }
0x147c   :  { %v2526_v50 = vmul.f32 1.0614054, %v3570_v42 }
0x147d   :  { %v3572_v2 = vpop.eup %3571 }
0x147e   :  { %v2527_v51 = vadd.f32 -1.4531521, %v2526_v50 }
0x1480   :  { %v2528_v52 = vmul.f32 %v3570_v42, %v2527_v51 }
0x1482   :  { %v2529_v53 = vadd.f32 1.4214138, %v2528_v52 }
0x1484   :  { %v2530_v54 = vmul.f32 %v3570_v42, %v2529_v53 }
0x1486   :  { %v2531_v55 = vadd.f32 -0.28449672, %v2530_v54 }
0x1488   :  { %v2532_v60 = vmul.f32 %v3570_v42, %v2531_v55 }
0x148a   :  { %v2533_v62 = vadd.f32 0.2548296, %v2532_v60 }
0x148c   :  { %v2534_v1 = vmul.f32 %v3570_v42, %v2533_v62 }
0x148e   :  { %v2539_v4 = vmul.f32 %v3572_v2, %v2534_v1 }
0x1490   :  { %v2540_v5 = vsub.f32 1.0, %v2539_v4 }
0x1492   :  { %v2542_v7 = vsub.f32 0.0, %v2540_v5 }
0x1494   :  { %v2543_v8 = vsel %vm2541_vm0, %v2542_v7, %v2540_v5 }
0x1495   :  { %v2544_v27 = vadd.f32 1.0, %v2543_v8 }
0x1497   :  { %v2545_v9 = vmul.f32 %v2544_v27, %v2519_v30 }
0x1499   :  { %3330 = vmatmul.mubr.f32.vlgmr.msra.gmra.mrb[22].mxu0 %v2545_v9 }
0x156c   :  { %v2633_v11 = vpop.f32.mrb[22].mxu0 }
0x156d   :  { %v2634_v12 = vadd.f32 %v2845_v10, %v2633_v11  ;;  %v3331_v13 = vpop.f32.mrb[23].mxu0 }
0x156f   :  { %v2637_v14 = vadd.f32 %v2634_v12, %v4225_v59  ;;  %v2665_v59 = vld [vmem:[%s4333_s2 + $0x60] sm:$0xff] }
0x1570   :  { %v3531_v57 = vpack.c.bf16 %v2666_v26, %v2665_v59 }
0x1571   :  { %v2640_v17 = vsel %vm554_vm5, %v2637_v14, 0.0 }
0x1572   :  { %2641 = vadd.xlane.f32.xlu0 %v2640_v17  ;;  %3532 = vmatpush3.bf16.msra.mxu1 %v3531_v57 }
0x15ff   :  { %v2642_v18 = vpop.xlane.xlu0 %2641 }
0x1600   :  { %v2643_v19 = vmul.f32 0.03125, %v2642_v18 }
0x1602   :  { %v2644_v20 = vsub.f32 %v2637_v14, %v2643_v19 }
0x1604   :  { %v2645_v21 = vmul.f32 %v2644_v20, %v2644_v20 }
0x1606   :  { %v2646_v61 = vsel %vm554_vm5, %v2645_v21, 0.0 }
0x1607   :  { %2647 = vadd.xlane.f32.xlu1 %v2646_v61 }
0x1694   :  { %v2648_v56 = vpop.xlane.xlu1 %2647 }
0x1695   :  { %v2649_v63 = vmul.f32 0.03125, %v2648_v56 }
0x1697   :  { %v2650_v0 = vadd.f32 1e-05, %v2649_v63 }
0x1699   :  { %3573 = vrsqrt.f32 %v2650_v0 }
0x16a3   :  { %v3574_v29 = vpop.eup %3573 }
0x16a4   :  { %v2652_v3 = vmul.f32 %v3574_v29, %v2644_v20 }
0x16a6   :  { %v2657_v32 = vmul.f32 %v2846_v58, %v2652_v3 }
0x16a8   :  { %v2662_v33 = vadd.f32 %v2847_v31, %v2657_v32 }
0x16aa   :  { %3341 = vmatmul.mubr.msk.f32.vlgmr.msra.gmra.mrb[32].mxu1 %vm66_vm1, %v2662_v33 }
0x177d   :  { %v2741_v35 = vpop.f32.mrb[32].mxu1 }
0x177e   :  { %v2742_v36 = vadd.f32 %v2848_v34, %v2741_v35  ;;  %v3342_v37 = vpop.f32.mrb[33].mxu1 }
0x1780   :  { %2745 = vst.msk [vmem:[#allocation2] sm:$0x3] %vm554_vm5, %v2742_v36 }
0x1781   :  { %3586 = shalt.err (!%p3583_p4)
}
0x1782   :  { %s3587_s9 = scalar_lea.hbm %s4335_s4, 32 }
0x1783   :  { %p3588_p5 = scmp.ne.s32.totalorder %s4335_s4, %s3587_s9  ;;  %p3591_p6 = scmp.lt.u32.totalorder %s3587_s9, %s4335_s4 }
0x1785   :  { %p3593_p7 = pnand %p3591_p6, %p3588_p5 }
0x1787   :  { %3596 = shalt.err (!%p3593_p7)
}
0x1788   :  { %2755 = dma.vmem_to_hbm [thread:$0]  %s2753_s5, 32, %s4335_s4, [#allocation3]  }
0x1789   :  { %3597 = dma.done.wait [#allocation3], 32  }
0x178a   :  { %3598 = vsyncadd [#allocation3], 4294967264 }
0x178b   :  { %2759 = vsyncpa [#allocation3], 1 }

</bundles_post_ra>
